<compile_context>
chip_gen: v5e
topology: v5e:2x2
jax: 0.10.0
libtpu: 0.0.40
codegen_flags: <defaults>
</compile_context>

<pallas_src>
import numpy as np
import jax
import jax.numpy as jnp
from jax import lax
from jax.experimental import pallas as pl
from jax.experimental.pallas import tpu as pltpu

N, C_IN, H, W = 2, 3, 24, 24          # Linear(3456, 60) forces 6*H*W == 3456 -> H*W == 576
HW = H * W                            # 576
HWP = 640                             # 576 padded to 5*128 -> every plane is lane-aligned
FEAT = 6 * HW                         # 3456 (torch Linear in_features)
FEATP = 6 * HWP                       # 3840 = 30*128, lane-dense padded feature length
HID, OUT = 60, 2
EPS = 1e-5


def my_net_kernel(wc_ref, bc_ref, x_ref, w12t_ref, b12_ref, out_ref, feat_ref):
    # wc_ref  : (3,3) SMEM   folded conv1∘bn1∘conv2∘bn2 channel map
    # bc_ref  : (3,)  SMEM   folded bias
    # x_ref   : (N*C_IN, HW) VMEM, row r = (sample r//3, channel r%3) plane, row-major pixels
    # w12t_ref: (OUT, FEATP) VMEM, composed liner2∘liner1 weight, plane-padded, lane-dense rows
    # b12_ref : (1, OUT) VMEM
    # feat_ref: (N, FEATP) VMEM scratch for the padded concat((silu_path, x), dim=1) feature
    x = x_ref[...]                                              # (6, 576)

    # Assemble flatten(concat((x1, x), dim=1)) directly into VMEM scratch; every
    # 576-pixel plane sits at a 128-aligned 640-lane slot, pad lanes stay zero.
    feat_ref[...] = jnp.zeros_like(feat_ref)
    for n in range(N):                                          # tiny & static -> unrolled
        xr = [x[n * C_IN + c:n * C_IN + c + 1, :] for c in range(C_IN)]   # (1,576) each
        for o in range(C_IN):
            # single 3x3 channel affine (conv1∘bn1∘conv2∘bn2), exact VPU math
            z = (bc_ref[o]
                 + wc_ref[o, 0] * xr[0]
                 + wc_ref[o, 1] * xr[1]
                 + wc_ref[o, 2] * xr[2])
            feat_ref[n:n + 1, o * HWP:o * HWP + HW] = z / (1.0 + jnp.exp(-z))   # exact SiLU
        for c in range(C_IN):
            feat_ref[n:n + 1, (C_IN + c) * HWP:(C_IN + c) * HWP + HW] = xr[c]

    # Composed liner2(liner1(.)): one lane-dense NT contraction (M=2, K=3840, Nout=2).
    # w12t pad columns are zero, so the zero pad lanes in feat contribute nothing.
    y = lax.dot_general(feat_ref[...], w12t_ref[...],
                        (((1,), (1,)), ((), ())),
                        preferred_element_type=jnp.float32) + b12_ref[...]

    # --- nn.Softmax(dim=0): softmax across the batch dimension ---
    m = jnp.max(y, axis=0, keepdims=True)
    e = jnp.exp(y - m)
    out_ref[...] = e / jnp.sum(e, axis=0, keepdims=True)


def _vmem_spec(shape):
    # Whole-array block (last two dims equal the full array dims -> no (8,128) issue).
    return pl.BlockSpec(shape, lambda i, r=len(shape): (0,) * r)


_SMEM_SPEC = pl.BlockSpec(memory_space=pltpu.MemorySpace.SMEM)


def prepare_params(p):
    """One-time weight preparation (NOT in the per-inference path).

    Folds eval-mode BatchNorm into the 1x1 convs, composes the two convs into a single
    3x3 channel affine, composes liner1 and liner2 into one (OUT, 3456) map, and
    re-lays it out as a lane-dense, plane-padded (OUT, FEATP) matrix whose columns
    match the in-kernel feature layout (pad columns are zero).
    """
    s1 = p["bn1_gamma"] / jnp.sqrt(p["bn1_var"] + EPS)                    # (6,)
    s2 = p["bn2_gamma"] / jnp.sqrt(p["bn2_var"] + EPS)                    # (3,)
    w1e = p["conv1_w"] * s1[:, None]                                      # (6, 3)
    b1e = s1 * (p["conv1_b"] - p["bn1_mean"]) + p["bn1_beta"]             # (6,)
    w2e = p["conv2_w"] * s2[:, None]                                      # (3, 6)
    b2e = s2 * (p["conv2_b"] - p["bn2_mean"]) + p["bn2_beta"]             # (3,)
    wc = w2e @ w1e                                                        # (3, 3)
    bc = w2e @ b1e + b2e                                                  # (3,)

    # Compose the two Linears (no nonlinearity between them):
    #   y = f @ lin1_w.T @ lin2_w.T + (lin1_b @ lin2_w.T + lin2_b)
    w12 = p["lin2_w"] @ p["lin1_w"]                                       # (2, 3456)
    b12 = p["lin1_b"] @ p["lin2_w"].T + p["lin2_b"]                       # (2,)

    # Column index = cat_channel*HWP + pixel; pad columns are zero so the zero pad
    # lanes of the in-kernel feature contribute nothing.  Stored transposed
    # (OUT, FEATP) so HBM rows are dense 15 KB bursts (not 8-byte segments).
    w12 = w12.reshape(OUT, 6, HW)                                         # (2, 6, 576)
    w12 = jnp.pad(w12, ((0, 0), (0, 0), (0, HWP - HW)))                   # (2, 6, 640)
    w12t = w12.reshape(OUT, FEATP)                                        # (2, 3840)

    return {
        "wc": wc.astype(jnp.float32),
        "bc": bc.astype(jnp.float32),
        "w12t": w12t.astype(jnp.float32),
        "b12": b12.reshape(1, OUT).astype(jnp.float32),
    }


@jax.jit
def my_net_forward(x, prep):
    # (N, C, H, W) -> (N*C, HW): pure bitcast reshape, no separate pad/copy fusion.
    x_rows = x.reshape(N * C_IN, HW)                                      # (6, 576)

    return pl.pallas_call(
        my_net_kernel,
        out_shape=jax.ShapeDtypeStruct((N, OUT), jnp.float32),
        grid=(1,),
        in_specs=[_SMEM_SPEC, _SMEM_SPEC,
                  _vmem_spec((N * C_IN, HW)),
                  _vmem_spec((OUT, FEATP)),
                  _vmem_spec((1, OUT))],
        out_specs=_vmem_spec((N, OUT)),
        scratch_shapes=[pltpu.VMEM((N, FEATP), jnp.float32)],
        compiler_params=pltpu.CompilerParams(dimension_semantics=("arbitrary",)),
    )(prep["wc"], prep["bc"], x_rows, prep["w12t"], prep["b12"])


def my_net_reference(x, p):
    """Plain-JAX replica of the PyTorch forward (NCHW), for validation."""
    s1 = p["bn1_gamma"] / jnp.sqrt(p["bn1_var"] + EPS)
    s2 = p["bn2_gamma"] / jnp.sqrt(p["bn2_var"] + EPS)
    h1 = jnp.einsum("oc,nchw->nohw", p["conv1_w"], x) + p["conv1_b"][None, :, None, None]
    h1 = (h1 - p["bn1_mean"][None, :, None, None]) * s1[None, :, None, None] \
         + p["bn1_beta"][None, :, None, None]
    h2 = jnp.einsum("oc,nchw->nohw", p["conv2_w"], h1) + p["conv2_b"][None, :, None, None]
    h2 = (h2 - p["bn2_mean"][None, :, None, None]) * s2[None, :, None, None] \
         + p["bn2_beta"][None, :, None, None]
    x1 = h2 / (1.0 + jnp.exp(-h2))                     # SiLU
    x3 = jnp.concatenate([x1, x], axis=1)              # (N, 6, H, W)
    f = x3.reshape(N, -1)                              # (N, 3456)
    y1 = f @ p["lin1_w"].T + p["lin1_b"]
    y2 = y1 @ p["lin2_w"].T + p["lin2_b"]
    m = jnp.max(y2, axis=0, keepdims=True)
    e = jnp.exp(y2 - m)
    return e / jnp.sum(e, axis=0, keepdims=True)


def init_params(key):
    ks = jax.random.split(key, 8)

    def u(k, shape, fan_in):
        bound = 1.0 / np.sqrt(fan_in)
        return jax.random.uniform(k, shape, jnp.float32, -bound, bound)

    return {
        # 1x1 conv weights stored as (out_ch, in_ch)
        "conv1_w": u(ks[0], (6, 3), 3),         "conv1_b": u(ks[1], (6,), 3),
        "conv2_w": u(ks[2], (3, 6), 6),         "conv2_b": u(ks[3], (3,), 6),
        "lin1_w":  u(ks[4], (HID, FEAT), FEAT), "lin1_b": u(ks[5], (HID,), FEAT),
        "lin2_w":  u(ks[6], (OUT, HID), HID),   "lin2_b": u(ks[7], (OUT,), HID),
        # BatchNorm params/buffers at their fresh-init values (eval semantics)
        "bn1_gamma": jnp.ones((6,), jnp.float32), "bn1_beta": jnp.zeros((6,), jnp.float32),
        "bn1_mean":  jnp.zeros((6,), jnp.float32), "bn1_var":  jnp.ones((6,), jnp.float32),
        "bn2_gamma": jnp.ones((3,), jnp.float32), "bn2_beta": jnp.zeros((3,), jnp.float32),
        "bn2_mean":  jnp.zeros((3,), jnp.float32), "bn2_var":  jnp.ones((3,), jnp.float32),
    }


if __name__ == "__main__":
    key = jax.random.PRNGKey(0)
    kx, kp = jax.random.split(key)
    params = init_params(kp)
    x = jax.random.normal(kx, (N, C_IN, H, W), dtype=jnp.float32)   # NCHW, like PyTorch

    prep = prepare_params(params)          # one-time weight prep, outside the call path
    out = my_net_forward(x, prep)
    out = jax.block_until_ready(out)

    ref = my_net_reference(x, params)
    # Tolerance is slightly looser than before: composing liner1∘liner2 offline changes
    # the f32 rounding/association of the K=3456 contraction vs. the two-stage reference.
    np.testing.assert_allclose(np.asarray(out), np.asarray(ref), rtol=1e-3, atol=2e-4)
    assert out.shape == (N, OUT)
    print("KERNEL_OK")
</pallas_src>

<mosaic_0001>
module attributes {stable_mosaic.version = 11 : i64} {
  func.func @my_net_kernel(%arg0: i32, %arg1: memref<3x3xf32, #tpu.memory_space<smem>>, %arg2: memref<3xf32, #tpu.memory_space<smem>>, %arg3: memref<6x576xf32, #tpu.memory_space<vmem>>, %arg4: memref<2x3840xf32, #tpu.memory_space<vmem>>, %arg5: memref<1x2xf32, #tpu.memory_space<vmem>>, %arg6: memref<2x2xf32, #tpu.memory_space<vmem>>, %arg7: memref<2x3840xf32, #tpu.memory_space<vmem>>) attributes {dimension_semantics = [#tpu.dimension_semantics<arbitrary>], iteration_bounds = array<i64: 1>, scalar_prefetch = 0 : i64, scratch_operands = 1 : i64, tpu.core_type = #tpu.core_type<tc>, window_params = [{transform_indices = @transform_0, window_bounds = array<i64: 3, 3>}, {transform_indices = @transform_1, window_bounds = array<i64: 3>}, {pipeline_mode = #tpu.pipeline_mode<synchronous>, transform_indices = @transform_2, window_bounds = array<i64: 6, 576>}, {pipeline_mode = #tpu.pipeline_mode<synchronous>, transform_indices = @transform_3, window_bounds = array<i64: 2, 3840>}, {pipeline_mode = #tpu.pipeline_mode<synchronous>, transform_indices = @transform_4, window_bounds = array<i64: 1, 2>}, {pipeline_mode = #tpu.pipeline_mode<synchronous>, transform_indices = @transform_5, window_bounds = array<i64: 2, 2>}]} {
    %c0 = arith.constant 0 : index
    %c0_0 = arith.constant 0 : index
    %0 = vector.load %arg3[%c0, %c0_0] : memref<6x576xf32, #tpu.memory_space<vmem>>, vector<6x576xf32>
    %cst = arith.constant 0.000000e+00 : f32
    %1 = vector.broadcast %cst : f32 to vector<2x3840xf32>
    %c0_1 = arith.constant 0 : index
    %c0_2 = arith.constant 0 : index
    %2 = vector.load %arg7[%c0_1, %c0_2] : memref<2x3840xf32, #tpu.memory_space<vmem>>, vector<2x3840xf32>
    tpu.vector_store %arg7[%c0_1, %c0_2], %1 {strides = array<i32>} : memref<2x3840xf32, #tpu.memory_space<vmem>>, vector<2x3840xf32>,
    %3 = vector.extract_strided_slice %0 {offsets = [0, 0], sizes = [1, 576], strides = [1, 1]} : vector<6x576xf32> to vector<1x576xf32>
    %4 = vector.extract_strided_slice %0 {offsets = [1, 0], sizes = [1, 576], strides = [1, 1]} : vector<6x576xf32> to vector<1x576xf32>
    %5 = vector.extract_strided_slice %0 {offsets = [2, 0], sizes = [1, 576], strides = [1, 1]} : vector<6x576xf32> to vector<1x576xf32>
    %c0_3 = arith.constant 0 : index
    %6 = memref.load %arg2[%c0_3] : memref<3xf32, #tpu.memory_space<smem>>
    %c0_4 = arith.constant 0 : index
    %c0_5 = arith.constant 0 : index
    %7 = memref.load %arg1[%c0_4, %c0_5] : memref<3x3xf32, #tpu.memory_space<smem>>
    %8 = vector.broadcast %7 : f32 to vector<1x576xf32>
    %9 = arith.mulf %8, %3 : vector<1x576xf32>
    %10 = vector.broadcast %6 : f32 to vector<1x576xf32>
    %11 = arith.addf %10, %9 : vector<1x576xf32>
    %c0_6 = arith.constant 0 : index
    %c1 = arith.constant 1 : index
    %12 = memref.load %arg1[%c0_6, %c1] : memref<3x3xf32, #tpu.memory_space<smem>>
    %13 = vector.broadcast %12 : f32 to vector<1x576xf32>
    %14 = arith.mulf %13, %4 : vector<1x576xf32>
    %15 = arith.addf %11, %14 : vector<1x576xf32>
    %c0_7 = arith.constant 0 : index
    %c2 = arith.constant 2 : index
    %16 = memref.load %arg1[%c0_7, %c2] : memref<3x3xf32, #tpu.memory_space<smem>>
    %17 = vector.broadcast %16 : f32 to vector<1x576xf32>
    %18 = arith.mulf %17, %5 : vector<1x576xf32>
    %19 = arith.addf %15, %18 : vector<1x576xf32>
    %cst_8 = arith.constant 0.000000e+00 : f32
    %20 = vector.broadcast %cst_8 : f32 to vector<1x576xf32>
    %21 = arith.subf %20, %19 : vector<1x576xf32>
    %22 = math.exp %21 : vector<1x576xf32>
    %cst_9 = arith.constant 1.000000e+00 : f32
    %23 = vector.broadcast %cst_9 : f32 to vector<1x576xf32>
    %24 = arith.addf %23, %22 : vector<1x576xf32>
    %25 = arith.divf %19, %24 : vector<1x576xf32>
    %c0_10 = arith.constant 0 : index
    %c0_11 = arith.constant 0 : index
    %26 = vector.load %arg7[%c0_10, %c0_11] : memref<2x3840xf32, #tpu.memory_space<vmem>>, vector<1x576xf32>
    tpu.vector_store %arg7[%c0_10, %c0_11], %25 {strides = array<i32>} : memref<2x3840xf32, #tpu.memory_space<vmem>>, vector<1x576xf32>,
    %c1_12 = arith.constant 1 : index
    %27 = memref.load %arg2[%c1_12] : memref<3xf32, #tpu.memory_space<smem>>
    %c1_13 = arith.constant 1 : index
    %c0_14 = arith.constant 0 : index
    %28 = memref.load %arg1[%c1_13, %c0_14] : memref<3x3xf32, #tpu.memory_space<smem>>
    %29 = vector.broadcast %28 : f32 to vector<1x576xf32>
    %30 = arith.mulf %29, %3 : vector<1x576xf32>
    %31 = vector.broadcast %27 : f32 to vector<1x576xf32>
    %32 = arith.addf %31, %30 : vector<1x576xf32>
    %c1_15 = arith.constant 1 : index
    %c1_16 = arith.constant 1 : index
    %33 = memref.load %arg1[%c1_15, %c1_16] : memref<3x3xf32, #tpu.memory_space<smem>>
    %34 = vector.broadcast %33 : f32 to vector<1x576xf32>
    %35 = arith.mulf %34, %4 : vector<1x576xf32>
    %36 = arith.addf %32, %35 : vector<1x576xf32>
    %c1_17 = arith.constant 1 : index
    %c2_18 = arith.constant 2 : index
    %37 = memref.load %arg1[%c1_17, %c2_18] : memref<3x3xf32, #tpu.memory_space<smem>>
    %38 = vector.broadcast %37 : f32 to vector<1x576xf32>
    %39 = arith.mulf %38, %5 : vector<1x576xf32>
    %40 = arith.addf %36, %39 : vector<1x576xf32>
    %cst_19 = arith.constant 0.000000e+00 : f32
    %41 = vector.broadcast %cst_19 : f32 to vector<1x576xf32>
    %42 = arith.subf %41, %40 : vector<1x576xf32>
    %43 = math.exp %42 : vector<1x576xf32>
    %cst_20 = arith.constant 1.000000e+00 : f32
    %44 = vector.broadcast %cst_20 : f32 to vector<1x576xf32>
    %45 = arith.addf %44, %43 : vector<1x576xf32>
    %46 = arith.divf %40, %45 : vector<1x576xf32>
    %c0_21 = arith.constant 0 : index
    %c640 = arith.constant 640 : index
    %47 = vector.load %arg7[%c0_21, %c640] : memref<2x3840xf32, #tpu.memory_space<vmem>>, vector<1x576xf32>
    tpu.vector_store %arg7[%c0_21, %c640], %46 {strides = array<i32>} : memref<2x3840xf32, #tpu.memory_space<vmem>>, vector<1x576xf32>,
    %c2_22 = arith.constant 2 : index
    %48 = memref.load %arg2[%c2_22] : memref<3xf32, #tpu.memory_space<smem>>
    %c2_23 = arith.constant 2 : index
    %c0_24 = arith.constant 0 : index
    %49 = memref.load %arg1[%c2_23, %c0_24] : memref<3x3xf32, #tpu.memory_space<smem>>
    %50 = vector.broadcast %49 : f32 to vector<1x576xf32>
    %51 = arith.mulf %50, %3 : vector<1x576xf32>
    %52 = vector.broadcast %48 : f32 to vector<1x576xf32>
    %53 = arith.addf %52, %51 : vector<1x576xf32>
    %c2_25 = arith.constant 2 : index
    %c1_26 = arith.constant 1 : index
    %54 = memref.load %arg1[%c2_25, %c1_26] : memref<3x3xf32, #tpu.memory_space<smem>>
    %55 = vector.broadcast %54 : f32 to vector<1x576xf32>
    %56 = arith.mulf %55, %4 : vector<1x576xf32>
    %57 = arith.addf %53, %56 : vector<1x576xf32>
    %c2_27 = arith.constant 2 : index
    %c2_28 = arith.constant 2 : index
    %58 = memref.load %arg1[%c2_27, %c2_28] : memref<3x3xf32, #tpu.memory_space<smem>>
    %59 = vector.broadcast %58 : f32 to vector<1x576xf32>
    %60 = arith.mulf %59, %5 : vector<1x576xf32>
    %61 = arith.addf %57, %60 : vector<1x576xf32>
    %cst_29 = arith.constant 0.000000e+00 : f32
    %62 = vector.broadcast %cst_29 : f32 to vector<1x576xf32>
    %63 = arith.subf %62, %61 : vector<1x576xf32>
    %64 = math.exp %63 : vector<1x576xf32>
    %cst_30 = arith.constant 1.000000e+00 : f32
    %65 = vector.broadcast %cst_30 : f32 to vector<1x576xf32>
    %66 = arith.addf %65, %64 : vector<1x576xf32>
    %67 = arith.divf %61, %66 : vector<1x576xf32>
    %c0_31 = arith.constant 0 : index
    %c1280 = arith.constant 1280 : index
    %68 = vector.load %arg7[%c0_31, %c1280] : memref<2x3840xf32, #tpu.memory_space<vmem>>, vector<1x576xf32>
    tpu.vector_store %arg7[%c0_31, %c1280], %67 {strides = array<i32>} : memref<2x3840xf32, #tpu.memory_space<vmem>>, vector<1x576xf32>,
    %c0_32 = arith.constant 0 : index
    %c1920 = arith.constant 1920 : index
    %69 = vector.load %arg7[%c0_32, %c1920] : memref<2x3840xf32, #tpu.memory_space<vmem>>, vector<1x576xf32>
    tpu.vector_store %arg7[%c0_32, %c1920], %3 {strides = array<i32>} : memref<2x3840xf32, #tpu.memory_space<vmem>>, vector<1x576xf32>,
    %c0_33 = arith.constant 0 : index
    %c2560 = arith.constant 2560 : index
    %70 = vector.load %arg7[%c0_33, %c2560] : memref<2x3840xf32, #tpu.memory_space<vmem>>, vector<1x576xf32>
    tpu.vector_store %arg7[%c0_33, %c2560], %4 {strides = array<i32>} : memref<2x3840xf32, #tpu.memory_space<vmem>>, vector<1x576xf32>,
    %c0_34 = arith.constant 0 : index
    %c3200 = arith.constant 3200 : index
    %71 = vector.load %arg7[%c0_34, %c3200] : memref<2x3840xf32, #tpu.memory_space<vmem>>, vector<1x576xf32>
    tpu.vector_store %arg7[%c0_34, %c3200], %5 {strides = array<i32>} : memref<2x3840xf32, #tpu.memory_space<vmem>>, vector<1x576xf32>,
    %72 = vector.extract_strided_slice %0 {offsets = [3, 0], sizes = [1, 576], strides = [1, 1]} : vector<6x576xf32> to vector<1x576xf32>
    %73 = vector.extract_strided_slice %0 {offsets = [4, 0], sizes = [1, 576], strides = [1, 1]} : vector<6x576xf32> to vector<1x576xf32>
    %74 = vector.extract_strided_slice %0 {offsets = [5, 0], sizes = [1, 576], strides = [1, 1]} : vector<6x576xf32> to vector<1x576xf32>
    %c0_35 = arith.constant 0 : index
    %75 = memref.load %arg2[%c0_35] : memref<3xf32, #tpu.memory_space<smem>>
    %c0_36 = arith.constant 0 : index
    %c0_37 = arith.constant 0 : index
    %76 = memref.load %arg1[%c0_36, %c0_37] : memref<3x3xf32, #tpu.memory_space<smem>>
    %77 = vector.broadcast %76 : f32 to vector<1x576xf32>
    %78 = arith.mulf %77, %72 : vector<1x576xf32>
    %79 = vector.broadcast %75 : f32 to vector<1x576xf32>
    %80 = arith.addf %79, %78 : vector<1x576xf32>
    %c0_38 = arith.constant 0 : index
    %c1_39 = arith.constant 1 : index
    %81 = memref.load %arg1[%c0_38, %c1_39] : memref<3x3xf32, #tpu.memory_space<smem>>
    %82 = vector.broadcast %81 : f32 to vector<1x576xf32>
    %83 = arith.mulf %82, %73 : vector<1x576xf32>
    %84 = arith.addf %80, %83 : vector<1x576xf32>
    %c0_40 = arith.constant 0 : index
    %c2_41 = arith.constant 2 : index
    %85 = memref.load %arg1[%c0_40, %c2_41] : memref<3x3xf32, #tpu.memory_space<smem>>
    %86 = vector.broadcast %85 : f32 to vector<1x576xf32>
    %87 = arith.mulf %86, %74 : vector<1x576xf32>
    %88 = arith.addf %84, %87 : vector<1x576xf32>
    %cst_42 = arith.constant 0.000000e+00 : f32
    %89 = vector.broadcast %cst_42 : f32 to vector<1x576xf32>
    %90 = arith.subf %89, %88 : vector<1x576xf32>
    %91 = math.exp %90 : vector<1x576xf32>
    %cst_43 = arith.constant 1.000000e+00 : f32
    %92 = vector.broadcast %cst_43 : f32 to vector<1x576xf32>
    %93 = arith.addf %92, %91 : vector<1x576xf32>
    %94 = arith.divf %88, %93 : vector<1x576xf32>
    %c1_44 = arith.constant 1 : index
    %c0_45 = arith.constant 0 : index
    %95 = vector.load %arg7[%c1_44, %c0_45] : memref<2x3840xf32, #tpu.memory_space<vmem>>, vector<1x576xf32>
    tpu.vector_store %arg7[%c1_44, %c0_45], %94 {strides = array<i32>} : memref<2x3840xf32, #tpu.memory_space<vmem>>, vector<1x576xf32>,
    %c1_46 = arith.constant 1 : index
    %96 = memref.load %arg2[%c1_46] : memref<3xf32, #tpu.memory_space<smem>>
    %c1_47 = arith.constant 1 : index
    %c0_48 = arith.constant 0 : index
    %97 = memref.load %arg1[%c1_47, %c0_48] : memref<3x3xf32, #tpu.memory_space<smem>>
    %98 = vector.broadcast %97 : f32 to vector<1x576xf32>
    %99 = arith.mulf %98, %72 : vector<1x576xf32>
    %100 = vector.broadcast %96 : f32 to vector<1x576xf32>
    %101 = arith.addf %100, %99 : vector<1x576xf32>
    %c1_49 = arith.constant 1 : index
    %c1_50 = arith.constant 1 : index
    %102 = memref.load %arg1[%c1_49, %c1_50] : memref<3x3xf32, #tpu.memory_space<smem>>
    %103 = vector.broadcast %102 : f32 to vector<1x576xf32>
    %104 = arith.mulf %103, %73 : vector<1x576xf32>
    %105 = arith.addf %101, %104 : vector<1x576xf32>
    %c1_51 = arith.constant 1 : index
    %c2_52 = arith.constant 2 : index
    %106 = memref.load %arg1[%c1_51, %c2_52] : memref<3x3xf32, #tpu.memory_space<smem>>
    %107 = vector.broadcast %106 : f32 to vector<1x576xf32>
    %108 = arith.mulf %107, %74 : vector<1x576xf32>
    %109 = arith.addf %105, %108 : vector<1x576xf32>
    %cst_53 = arith.constant 0.000000e+00 : f32
    %110 = vector.broadcast %cst_53 : f32 to vector<1x576xf32>
    %111 = arith.subf %110, %109 : vector<1x576xf32>
    %112 = math.exp %111 : vector<1x576xf32>
    %cst_54 = arith.constant 1.000000e+00 : f32
    %113 = vector.broadcast %cst_54 : f32 to vector<1x576xf32>
    %114 = arith.addf %113, %112 : vector<1x576xf32>
    %115 = arith.divf %109, %114 : vector<1x576xf32>
    %c1_55 = arith.constant 1 : index
    %c640_56 = arith.constant 640 : index
    %116 = vector.load %arg7[%c1_55, %c640_56] : memref<2x3840xf32, #tpu.memory_space<vmem>>, vector<1x576xf32>
    tpu.vector_store %arg7[%c1_55, %c640_56], %115 {strides = array<i32>} : memref<2x3840xf32, #tpu.memory_space<vmem>>, vector<1x576xf32>,
    %c2_57 = arith.constant 2 : index
    %117 = memref.load %arg2[%c2_57] : memref<3xf32, #tpu.memory_space<smem>>
    %c2_58 = arith.constant 2 : index
    %c0_59 = arith.constant 0 : index
    %118 = memref.load %arg1[%c2_58, %c0_59] : memref<3x3xf32, #tpu.memory_space<smem>>
    %119 = vector.broadcast %118 : f32 to vector<1x576xf32>
    %120 = arith.mulf %119, %72 : vector<1x576xf32>
    %121 = vector.broadcast %117 : f32 to vector<1x576xf32>
    %122 = arith.addf %121, %120 : vector<1x576xf32>
    %c2_60 = arith.constant 2 : index
    %c1_61 = arith.constant 1 : index
    %123 = memref.load %arg1[%c2_60, %c1_61] : memref<3x3xf32, #tpu.memory_space<smem>>
    %124 = vector.broadcast %123 : f32 to vector<1x576xf32>
    %125 = arith.mulf %124, %73 : vector<1x576xf32>
    %126 = arith.addf %122, %125 : vector<1x576xf32>
    %c2_62 = arith.constant 2 : index
    %c2_63 = arith.constant 2 : index
    %127 = memref.load %arg1[%c2_62, %c2_63] : memref<3x3xf32, #tpu.memory_space<smem>>
    %128 = vector.broadcast %127 : f32 to vector<1x576xf32>
    %129 = arith.mulf %128, %74 : vector<1x576xf32>
    %130 = arith.addf %126, %129 : vector<1x576xf32>
    %cst_64 = arith.constant 0.000000e+00 : f32
    %131 = vector.broadcast %cst_64 : f32 to vector<1x576xf32>
    %132 = arith.subf %131, %130 : vector<1x576xf32>
    %133 = math.exp %132 : vector<1x576xf32>
    %cst_65 = arith.constant 1.000000e+00 : f32
    %134 = vector.broadcast %cst_65 : f32 to vector<1x576xf32>
    %135 = arith.addf %134, %133 : vector<1x576xf32>
    %136 = arith.divf %130, %135 : vector<1x576xf32>
    %c1_66 = arith.constant 1 : index
    %c1280_67 = arith.constant 1280 : index
    %137 = vector.load %arg7[%c1_66, %c1280_67] : memref<2x3840xf32, #tpu.memory_space<vmem>>, vector<1x576xf32>
    tpu.vector_store %arg7[%c1_66, %c1280_67], %136 {strides = array<i32>} : memref<2x3840xf32, #tpu.memory_space<vmem>>, vector<1x576xf32>,
    %c1_68 = arith.constant 1 : index
    %c1920_69 = arith.constant 1920 : index
    %138 = vector.load %arg7[%c1_68, %c1920_69] : memref<2x3840xf32, #tpu.memory_space<vmem>>, vector<1x576xf32>
    tpu.vector_store %arg7[%c1_68, %c1920_69], %72 {strides = array<i32>} : memref<2x3840xf32, #tpu.memory_space<vmem>>, vector<1x576xf32>,
    %c1_70 = arith.constant 1 : index
    %c2560_71 = arith.constant 2560 : index
    %139 = vector.load %arg7[%c1_70, %c2560_71] : memref<2x3840xf32, #tpu.memory_space<vmem>>, vector<1x576xf32>
    tpu.vector_store %arg7[%c1_70, %c2560_71], %73 {strides = array<i32>} : memref<2x3840xf32, #tpu.memory_space<vmem>>, vector<1x576xf32>,
    %c1_72 = arith.constant 1 : index
    %c3200_73 = arith.constant 3200 : index
    %140 = vector.load %arg7[%c1_72, %c3200_73] : memref<2x3840xf32, #tpu.memory_space<vmem>>, vector<1x576xf32>
    tpu.vector_store %arg7[%c1_72, %c3200_73], %74 {strides = array<i32>} : memref<2x3840xf32, #tpu.memory_space<vmem>>, vector<1x576xf32>,
    %c0_74 = arith.constant 0 : index
    %c0_75 = arith.constant 0 : index
    %141 = vector.load %arg7[%c0_74, %c0_75] : memref<2x3840xf32, #tpu.memory_space<vmem>>, vector<2x3840xf32>
    %c0_76 = arith.constant 0 : index
    %c0_77 = arith.constant 0 : index
    %142 = vector.load %arg4[%c0_76, %c0_77] : memref<2x3840xf32, #tpu.memory_space<vmem>>, vector<2x3840xf32>
    %cst_78 = arith.constant dense<0.000000e+00> : vector<2x2xf32>
    %143 = tpu.matmul %141, %142, %cst_78 {dimension_numbers = #tpu.dot_dimension_numbers<[1], [1], [0], [0], [0, 0, 1, 0], [], []>} : vector<2x3840xf32>, vector<2x3840xf32>, vector<2x2xf32> -> vector<2x2xf32>
    %c0_79 = arith.constant 0 : index
    %c0_80 = arith.constant 0 : index
    %144 = vector.load %arg5[%c0_79, %c0_80] : memref<1x2xf32, #tpu.memory_space<vmem>>, vector<1x2xf32>
    %145 = vector.broadcast %144 : vector<1x2xf32> to vector<2x2xf32>
    %146 = arith.addf %143, %145 : vector<2x2xf32>
    %cst_81 = arith.constant dense<0xFF800000> : vector<2xf32>
    %147 = vector.multi_reduction <maximumf>, %146, %cst_81 [0] : vector<2x2xf32> to vector<2xf32>
    %148 = vector.shape_cast %147 : vector<2xf32> to vector<1x2xf32>
    %149 = vector.broadcast %148 : vector<1x2xf32> to vector<2x2xf32>
    %150 = arith.subf %146, %149 : vector<2x2xf32>
    %151 = math.exp %150 : vector<2x2xf32>
    %cst_82 = arith.constant dense<0.000000e+00> : vector<2xf32>
    %152 = vector.multi_reduction <add>, %151, %cst_82 [0] : vector<2x2xf32> to vector<2xf32>
    %153 = vector.shape_cast %152 : vector<2xf32> to vector<1x2xf32>
    %154 = vector.broadcast %153 : vector<1x2xf32> to vector<2x2xf32>
    %155 = arith.divf %151, %154 : vector<2x2xf32>
    %c0_83 = arith.constant 0 : index
    %c0_84 = arith.constant 0 : index
    %156 = vector.load %arg6[%c0_83, %c0_84] : memref<2x2xf32, #tpu.memory_space<vmem>>, vector<2x2xf32>
    tpu.vector_store %arg6[%c0_83, %c0_84], %155 {strides = array<i32>} : memref<2x2xf32, #tpu.memory_space<vmem>>, vector<2x2xf32>,
    return
  }
  func.func @transform_0(%arg0: i32) -> (i32, i32) {
    %c0_i32 = arith.constant 0 : i32
    %c0_i32_0 = arith.constant 0 : i32
    %c0_i32_1 = arith.constant 0 : i32
    return %c0_i32, %c0_i32_0 : i32, i32
  }
  func.func @transform_1(%arg0: i32) -> i32 {
    %c0_i32 = arith.constant 0 : i32
    %c0_i32_0 = arith.constant 0 : i32
    return %c0_i32 : i32
  }
  func.func @transform_2(%arg0: i32) -> (i32, i32) {
    %c0_i32 = arith.constant 0 : i32
    %c0_i32_0 = arith.constant 0 : i32
    %c0_i32_1 = arith.constant 0 : i32
    return %c0_i32, %c0_i32_0 : i32, i32
  }
  func.func @transform_3(%arg0: i32) -> (i32, i32) {
    %c0_i32 = arith.constant 0 : i32
    %c0_i32_0 = arith.constant 0 : i32
    %c0_i32_1 = arith.constant 0 : i32
    return %c0_i32, %c0_i32_0 : i32, i32
  }
  func.func @transform_4(%arg0: i32) -> (i32, i32) {
    %c0_i32 = arith.constant 0 : i32
    %c0_i32_0 = arith.constant 0 : i32
    %c0_i32_1 = arith.constant 0 : i32
    return %c0_i32, %c0_i32_0 : i32, i32
  }
  func.func @transform_5(%arg0: i32) -> (i32, i32) {
    %c0_i32 = arith.constant 0 : i32
    %c0_i32_0 = arith.constant 0 : i32
    %c0_i32_1 = arith.constant 0 : i32
    return %c0_i32, %c0_i32_0 : i32, i32
  }
}

</mosaic_0001>

<bundles_post_ra>
// kernel: my_net_forward.1
= control target key start
LH: loop header
LB: loop body
LE: loop exit
PB: predicated region body
PF: predicated region fallthrough
CT: control target
= control target key end

     0   :  { %10 = vsyncpa [#allocation5], 0  ;;  %s2949_s0 = inlined_call_operand.vmem [shape: f32[3,3], index: 0, kind: input, shape index: {}]   ;;  %s2950_s1 = inlined_call_operand.vmem [shape: f32[3], index: 1, kind: input, shape index: {}]   ;;  %s2951_s2 = inlined_call_operand.vmem [shape: f32[6,576], index: 2, kind: input, shape index: {}]   ;;  %s2952_s3 = inlined_call_operand.vmem [shape: f32[2,3840], index: 3, kind: input, shape index: {}]   ;;  %s2953_s4 = inlined_call_operand.vmem [shape: f32[1,2], index: 4, kind: input, shape index: {}]   ;;  %s2954_s5 = inlined_call_operand.hbm [shape: f32[2,2], index: 5, kind: output, shape index: {}]  }
   0x1   :  { %11 = vsyncpa [#allocation7], 0 }
   0x2   :  { %12 = vsyncpa [#allocation4], 0  ;;  %s18_s20 = sshll.u32 %s2949_s0, 4  ;;  %s27_s23 = sshll.u32 %s2950_s1, 4  ;;  %s19_s20 = int_to_ptr.vmem [resolvable:$true] %s18_s20  ;;  %s28_s23 = int_to_ptr.vmem [resolvable:$true] %s27_s23 }
   0x3   :  { %s2172_s24 = smov [#allocation3]   ;;  %s2173_s25 = smov [#allocation6]  }
   0x4   :  { %21 = dma.vmem_to_smem %s19_s20, 64, %s2172_s24, [#allocation5]  }
   0x5   :  { %30 = dma.vmem_to_smem %s28_s23, 16, %s2173_s25, [#allocation7]  }
   0x6   :  { %2166 = dma.done.wait [#allocation5], 64  }
   0x7   :  { %2167 = vsyncadd [#allocation5], 4294967232 }
   0x8   :  { %2168 = dma.done.wait [#allocation7], 16  }
   0x9   :  { %2169 = vsyncadd [#allocation7], 4294967280 }
   0xa   :  { %45 = sfence }
   0xb   :  { %v2215_v0 = vld [vmem:[%s2951_s2] sm:$0x3f]  ;;  %v2174_v1 = vmov 0.0   ;;  %s59_s0 = sld [smem:[#allocation6]]  ;;  %v2221_v2 = vld [vmem:[%s2951_s2 + $0x8] sm:$0x3f] }
   0xc   :  { %619 = vst [vmem:[#allocation1] sm:$0xff] %v2215_v0  ;;  %s60_s1 = sld [smem:[#allocation3]]  ;;  %v2226_v3 = vld [vmem:[%s2951_s2 + $0x10] sm:$0x3f]  ;;  %v2231_v4 = vld [vmem:[%s2951_s2 + $0x18] sm:$0x3f] }
   0xd   :  { %51 = vst [vmem:[#allocation2] sm:$0xff] %v2174_v1  ;;  %s2029_s28 = sld [smem:[#allocation3 + $0x1]]  ;;  %v2236_v5 = vld [vmem:[%s2951_s2 + $0x20] sm:$0x3f] }
   0xe   :  { %52 = vst [vmem:[#allocation2 + $0x8] sm:$0xff] %v2174_v1  ;;  %s2030_s29 = sld [smem:[#allocation3 + $0x2]] }
   0xf   :  { %53 = vst [vmem:[#allocation2 + $0x10] sm:$0xff] %v2174_v1  ;;  %s2032_s2 = sld [smem:[#allocation3 + $0x80]] }
  0x10   :  { %54 = vst [vmem:[#allocation2 + $0x18] sm:$0xff] %v2174_v1  ;;  %s2033_s13 = sld [smem:[#allocation3 + $0x81]] }
  0x11   :  { %55 = vst [vmem:[#allocation2 + $0x20] sm:$0xff] %v2174_v1  ;;  %v67_v7 = vstv %s59_s0  ;;  %s2031_s14 = sld [smem:[#allocation6 + $0x1]] }
  0x12   :  { %56 = vst [vmem:[#allocation2 + $0x28] sm:$0xff] %v2174_v1  ;;  %v61_v6 = vstv %s60_s1  ;;  %s2273_s15 = sld [smem:[#allocation3 + $0x82]] }
  0x13   :  { %57 = vst [vmem:[#allocation2 + $0x30] sm:$0xff] %v2174_v1  ;;  %v62_v8 = vmul.f32 %v61_v6, %v2215_v0  ;;  %v63_v9 = vmul.f32 %v61_v6, %v2221_v2  ;;  %v64_v10 = vmul.f32 %v61_v6, %v2226_v3  ;;  %v65_v11 = vmul.f32 %v61_v6, %v2231_v4  ;;  %s2400_s16 = sld [smem:[#allocation3 + $0x100]] }
  0x14   :  { %58 = vst [vmem:[#allocation2 + $0x38] sm:$0xf] %v2174_v1  ;;  %v66_v12 = vmul.f32 %v61_v6, %v2236_v5  ;;  %v74_v13 = vstv %s2029_s28  ;;  %v101_v14 = vstv %s2030_s29  ;;  %s2443_s17 = sld [smem:[#allocation3 + $0x101]] }
  0x15   :  { %620 = vst [vmem:[#allocation1 + $0x9] sm:$0xff] %v2221_v2  ;;  %v68_v15 = vadd.f32 %v67_v7, %v62_v8  ;;  %v69_v16 = vadd.f32 %v67_v7, %v63_v9  ;;  %v70_v17 = vadd.f32 %v67_v7, %v64_v10  ;;  %v71_v18 = vadd.f32 %v67_v7, %v65_v11  ;;  %s2454_s18 = sld [smem:[#allocation6 + $0x2]] }
  0x16   :  { %621 = vst [vmem:[#allocation1 + $0x12] sm:$0xff] %v2226_v3  ;;  %v72_v19 = vadd.f32 %v67_v7, %v66_v12  ;;  %v75_v20 = vmul.f32 %v74_v13, %v2215_v0  ;;  %v76_v21 = vmul.f32 %v74_v13, %v2221_v2  ;;  %v77_v22 = vmul.f32 %v74_v13, %v2226_v3  ;;  %s2477_s19 = sld [smem:[#allocation3 + $0x102]] }
  0x17   :  { %622 = vst [vmem:[#allocation1 + $0x1b] sm:$0xff] %v2231_v4  ;;  %v78_v23 = vmul.f32 %v74_v13, %v2231_v4  ;;  %v79_v24 = vmul.f32 %v74_v13, %v2236_v5  ;;  %v102_v25 = vmul.f32 %v101_v14, %v2215_v0  ;;  %v103_v26 = vmul.f32 %v101_v14, %v2221_v2 }
  0x18   :  { %623 = vst [vmem:[#allocation1 + $0x24] sm:$0xff] %v2236_v5  ;;  %v85_v27 = vrot.slane %v75_v20, 1  ;;  %v86_v28 = vrot.slane %v76_v21, 1  ;;  %v87_v29 = vrot.slane %v77_v22, 1  ;;  %v104_v30 = vmul.f32 %v101_v14, %v2226_v3 }
  0x19   :  { %v88_v31 = vrot.slane %v78_v23, 1  ;;  %v89_v32 = vrot.slane %v79_v24, 1  ;;  %v105_v33 = vmul.f32 %v101_v14, %v2231_v4  ;;  %v106_v34 = vmul.f32 %v101_v14, %v2236_v5 }
  0x1a   :  { %v95_v35 = vadd.f32 %v85_v27, %v68_v15  ;;  %v96_v36 = vadd.f32 %v86_v28, %v69_v16  ;;  %v97_v37 = vadd.f32 %v87_v29, %v70_v17  ;;  %v112_v38 = vrot.slane %v102_v25, 2 }
  0x1b   :  { %v98_v39 = vadd.f32 %v88_v31, %v71_v18  ;;  %v99_v40 = vadd.f32 %v89_v32, %v72_v19  ;;  %v113_v41 = vrot.slane %v103_v26, 2  ;;  %v114_v42 = vrot.slane %v104_v30, 2 }
  0x1c   :  { %v115_v43 = vrot.slane %v105_v33, 2  ;;  %v116_v44 = vrot.slane %v106_v34, 2  ;;  %v2257_v45 = vadd.f32 %v112_v38, %v95_v35  ;;  %v247_v53 = vstv %s2032_s2  ;;  %s2018_s2 = sshll.u32 %s2954_s5, 4  ;;  %s2019_s2 = int_to_ptr.hbm [resolvable:$true] %s2018_s2 }
  0x1d   :  { %v2259_v46 = vadd.f32 %v113_v41, %v96_v36  ;;  %v2261_v47 = vadd.f32 %v114_v42, %v97_v37  ;;  %v248_v61 = vmul.f32 %v247_v53, %v2215_v0  ;;  %v249_v62 = vmul.f32 %v247_v53, %v2221_v2 }
  0x1e   :  { %v2263_v48 = vadd.f32 %v115_v43, %v98_v39  ;;  %v2265_v49 = vadd.f32 %v116_v44, %v99_v40  ;;  %v127_v50 = vsub.f32 0.0, %v2257_v45  ;;  %v250_v63 = vmul.f32 %v247_v53, %v2226_v3 }
  0x1f   :  { %v128_v51 = vsub.f32 0.0, %v2259_v46  ;;  %v129_v52 = vsub.f32 0.0, %v2261_v47  ;;  %v260_v1 = vstv %s2033_s13  ;;  %v251_v6 = vmul.f32 %v247_v53, %v2231_v4 }
  0x20   :  { %v130_v54 = vsub.f32 0.0, %v2263_v48  ;;  %v131_v55 = vsub.f32 0.0, %v2265_v49  ;;  %v132_v56 = vmul.f32 1.442695, %v127_v50  ;;  %v252_v7 = vmul.f32 %v247_v53, %v2236_v5 }
  0x21   :  { %v134_v57 = vmul.f32 1.442695, %v128_v51  ;;  %v136_v58 = vmul.f32 1.442695, %v129_v52  ;;  %v253_v8 = vstv %s2031_s14  ;;  %v261_v9 = vmul.f32 %v260_v1, %v2215_v0 }
  0x22   :  { %2054 = vpow2.f32 %v132_v56  ;;  %v138_v59 = vmul.f32 1.442695, %v130_v54  ;;  %v140_v60 = vmul.f32 1.442695, %v131_v55  ;;  %v262_v10 = vmul.f32 %v260_v1, %v2221_v2 }
  0x23   :  { %2056 = vpow2.f32 %v134_v57  ;;  %v263_v11 = vmul.f32 %v260_v1, %v2226_v3  ;;  %v264_v12 = vmul.f32 %v260_v1, %v2231_v4  ;;  %v265_v13 = vmul.f32 %v260_v1, %v2236_v5 }
  0x24   :  { %2058 = vpow2.f32 %v136_v58  ;;  %v254_v14 = vadd.f32 %v253_v8, %v248_v61  ;;  %v255_v15 = vadd.f32 %v253_v8, %v249_v62  ;;  %v271_v16 = vrot.slane %v261_v9, 1 }
  0x25   :  { %2060 = vpow2.f32 %v138_v59  ;;  %v272_v17 = vrot.slane %v262_v10, 1  ;;  %v256_v19 = vadd.f32 %v253_v8, %v250_v63  ;;  %v257_v20 = vadd.f32 %v253_v8, %v251_v6 }
  0x26   :  { %2062 = vpow2.f32 %v140_v60  ;;  %v240_v23 = vlaneseq  ;;  %v258_v24 = vadd.f32 %v253_v8, %v252_v7  ;;  %v273_v25 = vrot.slane %v263_v11, 1 }
  0x27   :  { %v274_v28 = vrot.slane %v264_v12, 1  ;;  %v275_v29 = vrot.slane %v265_v13, 1  ;;  %v2289_v30 = vstv %s2273_s15  ;;  %v2294_v33 = vadd.f32 %v271_v16, %v254_v14 }
  0x28   :  { %v2055_v18 = vpop.eup %2054  ;;  %v2296_v34 = vadd.f32 %v272_v17, %v255_v15  ;;  %v2307_v42 = vadd.f32 %v273_v25, %v256_v19  ;;  %v288_v11 = vmul.f32 %v2289_v30, %v2215_v0  ;;  %v289_v12 = vmul.f32 %v2289_v30, %v2221_v2 }
  0x29   :  { %v2057_v21 = vpop.eup %2056  ;;  %v2284_v22 = vadd.f32 1.0, %v2055_v18  ;;  %v2311_v43 = vadd.f32 %v274_v28, %v257_v20  ;;  %v2313_v44 = vadd.f32 %v275_v29, %v258_v24  ;;  %v290_v13 = vmul.f32 %v2289_v30, %v2226_v3 }
  0x2a   :  { %v2059_v26 = vpop.eup %2058  ;;  %v2286_v27 = vadd.f32 1.0, %v2057_v21  ;;  %v291_v21 = vmul.f32 %v2289_v30, %v2231_v4  ;;  %v292_v29 = vmul.f32 %v2289_v30, %v2236_v5 }
  0x2b   :  { %v2061_v31 = vpop.eup %2060  ;;  %v2291_v32 = vadd.f32 1.0, %v2059_v26  ;;  %2064 = vrcp.f32 %v2284_v22  ;;  %v156_v37 = vand.u32 2147483647, %v2284_v22  ;;  %v158_v38 = vand.u32 2147483648, %v2284_v22 }
  0x2c   :  { %v2063_v35 = vpop.eup %2062  ;;  %v2298_v36 = vadd.f32 1.0, %v2061_v31  ;;  %2066 = vrcp.f32 %v2286_v27  ;;  %v171_v40 = vand.u32 2147483647, %v2286_v27  ;;  %v173_v41 = vand.u32 2147483648, %v2286_v27 }
  0x2d   :  { %v2303_v39 = vadd.f32 1.0, %v2063_v35  ;;  %vm152_vm0 = vweird.f32 %v2284_v22  ;;  %2068 = vrcp.f32 %v2291_v32  ;;  %vm167_vm1 = vweird.f32 %v2286_v27 }
  0x2e   :  { %v186_v50 = vand.u32 2147483647, %v2291_v32  ;;  %v188_v51 = vand.u32 2147483648, %v2291_v32  ;;  %2070 = vrcp.f32 %v2298_v36  ;;  %vm2319_vm2 = vcmp.eq.f32.partialorder %v156_v37, 8.507059e+37 }
  0x2f   :  { %v159_v53 = vor.u32 1.1754944e-38, %v158_v38  ;;  %vm182_vm3 = vweird.f32 %v2291_v32  ;;  %v201_v54 = vand.u32 2147483647, %v2298_v36  ;;  %v203_v55 = vand.u32 2147483648, %v2298_v36 }
  0x30   :  { %vm2326_vm4 = vcmp.eq.f32.partialorder %v171_v40, 8.507059e+37  ;;  %v174_v58 = vor.u32 1.1754944e-38, %v173_v41  ;;  %v2330_v59 = vor.u32 1.1754944e-38, %v188_v51  ;;  %vm197_vm5 = vweird.f32 %v2298_v36 }
  0x31   :  { %v2065_v56 = vpop.eup %2064  ;;  %2072 = vrcp.f32 %v2303_v39  ;;  %v216_v62 = vand.u32 2147483647, %v2303_v39  ;;  %vm2338_vm9 = vcmp.eq.f32.partialorder %v186_v50, 8.507059e+37  ;;  %v2342_v6 = vor.u32 1.1754944e-38, %v203_v55 }
  0x32   :  { %v2067_v60 = vpop.eup %2066  ;;  %v148_v61 = vmul.f32 %v2065_v56, %v2284_v22  ;;  %vm153_vm6 = vweird.f32 %v2065_v56  ;;  %v218_v7 = vand.u32 2147483648, %v2303_v39  ;;  %vm2345_vm10 = vcmp.eq.f32.partialorder %v201_v54, 8.507059e+37 }
  0x33   :  { %v163_v63 = vmul.f32 %v2067_v60, %v2286_v27  ;;  %vm168_vm8 = vweird.f32 %v2067_v60  ;;  %v2069_v8 = vpop.eup %2068  ;;  %vm2357_vm13 = vcmp.eq.f32.partialorder %v216_v62, 8.507059e+37  ;;  %vm2366_vm15 = vmor %vm152_vm0, %vm153_vm6  ;;  %v298_v31 = vrot.slane %v288_v11, 2 }
  0x34   :  { %v149_v9 = vsub.f32 1.0, %v148_v61  ;;  %v2071_v14 = vpop.eup %2070  ;;  %v178_v16 = vmul.f32 %v2069_v8, %v2291_v32  ;;  %vm183_vm11 = vweird.f32 %v2069_v8  ;;  %v219_v17 = vor.u32 1.1754944e-38, %v218_v7  ;;  %vm2375_vm14 = vmor %vm167_vm1, %vm168_vm8 }
  0x35   :  { %v164_v15 = vsub.f32 1.0, %v163_v63  ;;  %v193_v19 = vmul.f32 %v2071_v14, %v2298_v36  ;;  %vm198_vm12 = vweird.f32 %v2071_v14  ;;  %vm2957_vm6 = vcmask 1041408   ;;  %vm2385_vm7 = vmor %vm182_vm3, %vm183_vm11 }
  0x36   :  { %v150_v18 = vmul.f32 %v2065_v56, %v149_v9  ;;  %v179_v28 = vsub.f32 1.0, %v178_v16  ;;  %v299_v50 = vrot.slane %v289_v12, 2  ;;  %v300_v51 = vrot.slane %v290_v13, 2  ;;  %vm2396_vm1 = vmor %vm197_vm5, %vm198_vm12 }
  0x37   :  { %v2073_v24 = vpop.eup %2072  ;;  %v165_v26 = vmul.f32 %v2067_v60, %v164_v15  ;;  %v194_v38 = vsub.f32 1.0, %v193_v19  ;;  %v301_v61 = vrot.slane %v291_v21, 2  ;;  %vm2956_vm3 = vcmask 1043459  }
  0x38   :  { %v151_v35 = vadd.f32 %v2065_v56, %v150_v18  ;;  %v208_v22 = vmul.f32 %v2073_v24, %v2303_v39  ;;  %vm213_vm0 = vweird.f32 %v2073_v24  ;;  %v180_v41 = vmul.f32 %v2069_v8, %v179_v28 }
  0x39   :  { %v166_v40 = vadd.f32 %v2067_v60, %v165_v26  ;;  %v195_v54 = vmul.f32 %v2071_v14, %v194_v38  ;;  %v302_v32 = vrot.slane %v292_v29, 2  ;;  %vm2976_vm5 = vweird.f32 %v2303_v39 }
  0x3a   :  { %v155_v30 = vsel %vm2366_vm15, %v2065_v56, %v151_v35  ;;  %v209_v55 = vsub.f32 1.0, %v208_v22  ;;  %v181_v7 = vadd.f32 %v2069_v8, %v180_v41  ;;  %vm2415_vm8 = vmor %vm2976_vm5, %vm213_vm0  ;;  %v2423_v57 = vadd.f32 %v299_v50, %v2296_v34 }
  0x3b   :  { %v160_v62 = vsel %vm2319_vm2, %v159_v53, %v155_v30  ;;  %v170_v63 = vsel %vm2375_vm14, %v2067_v60, %v166_v40  ;;  %v196_v53 = vadd.f32 %v2071_v14, %v195_v54  ;;  %vm2955_vm2 = vcmask 1042432  }
  0x3c   :  { %v2403_v9 = vmul.f32 %v160_v62, %v2257_v45  ;;  %v175_v52 = vsel %vm2326_vm4, %v174_v58, %v170_v63  ;;  %v210_v60 = vmul.f32 %v2073_v24, %v209_v55  ;;  %v185_v36 = vsel %vm2385_vm7, %v2069_v8, %v181_v7 }
  0x3d   :  { %v2408_v11 = vmul.f32 %v175_v52, %v2259_v46  ;;  %v2420_v45 = vadd.f32 %v298_v31, %v2294_v33  ;;  %v190_v46 = vsel %vm2338_vm9, %v2330_v59, %v185_v36  ;;  %v200_v58 = vsel %vm2396_vm1, %v2071_v14, %v196_v53 }
  0x3e   :  { %v211_v8 = vadd.f32 %v2073_v24, %v210_v60  ;;  %v2431_v39 = vadd.f32 %v300_v51, %v2307_v42  ;;  %v2434_v13 = vmul.f32 %v190_v46, %v2261_v47  ;;  %v205_v33 = vsel %vm2345_vm10, %v2342_v6, %v200_v58 }
  0x3f   :  { %v227_v34 = vrot.slane %v2408_v11, 7  ;;  %v2441_v15 = vadd.f32 %v301_v61, %v2311_v43  ;;  %v2446_v59 = vmul.f32 %v205_v33, %v2263_v48  ;;  %v2451_v47 = vadd.f32 %v302_v32, %v2313_v44 }
  0x40   :  { %v215_v42 = vsel %vm2415_vm8, %v2073_v24, %v211_v8  ;;  %v313_v1 = vsub.f32 0.0, %v2420_v45  ;;  %v228_v6 = vrot.slane %v2434_v13, 6  ;;  %vm2979_vm4 = vcmask 1040384  }
  0x41   :  { %v220_v43 = vsel %vm2357_vm13, %v219_v17, %v215_v42  ;;  %v232_v48 = vsel %vm2979_vm4, %v2403_v9, %v227_v34  ;;  %v314_v10 = vsub.f32 0.0, %v2423_v57  ;;  %v229_v44 = vrot.slane %v2446_v59, 5 }
  0x42   :  { %v2463_v14 = vmul.f32 %v220_v43, %v2265_v49  ;;  %v315_v16 = vsub.f32 0.0, %v2431_v39  ;;  %v316_v18 = vsub.f32 0.0, %v2441_v15  ;;  %v317_v19 = vsub.f32 0.0, %v2451_v47 }
  0x43   :  { %v318_v20 = vmul.f32 1.442695, %v313_v1  ;;  %v320_v17 = vmul.f32 1.442695, %v314_v10  ;;  %v426_v21 = vstv %s2400_s16  ;;  %v234_v25 = vsel %vm2957_vm6, %v232_v48, %v228_v6 }
  0x44   :  { %v230_v24 = vrot.slane %v2463_v14, 4  ;;  %v322_v26 = vmul.f32 1.442695, %v315_v16  ;;  %v324_v28 = vmul.f32 1.442695, %v316_v18  ;;  %vm2473_vm7 = vcmp.lt.s32.totalorder %v240_v23, 576 }
  0x45   :  { %2074 = vpow2.f32 %v318_v20  ;;  %v326_v29 = vmul.f32 1.442695, %v317_v19  ;;  %v427_v35 = vmul.f32 %v426_v21, %v2215_v0  ;;  %v428_v37 = vmul.f32 %v426_v21, %v2221_v2 }
  0x46   :  { %v236_v31 = vsel %vm2956_vm3, %v229_v44, %v230_v24  ;;  %2076 = vpow2.f32 %v320_v17  ;;  %v429_v23 = vmul.f32 %v426_v21, %v2226_v3  ;;  %v439_v22 = vstv %s2443_s17  ;;  %v625_v24 = vld [vmem:[#allocation1 + $0x1] ss:$9 sm:$0xff] }
  0x47   :  { %v238_v38 = vsel %vm2955_vm2, %v234_v25, %v236_v31  ;;  %2078 = vpow2.f32 %v322_v26  ;;  %v430_v40 = vmul.f32 %v426_v21, %v2231_v4  ;;  %v431_v41 = vmul.f32 %v426_v21, %v2236_v5  ;;  %629 = vst [vmem:[#allocation1] sm:$0xff] %v2215_v0 }
  0x48   :  { %244 = vst.msk [vmem:[#allocation2] ss:$2 sm:$0x1f] %vm2473_vm7, %v238_v38  ;;  %2080 = vpow2.f32 %v324_v28  ;;  %v432_v50 = vstv %s2454_s18  ;;  %v440_v51 = vmul.f32 %v439_v22, %v2215_v0  ;;  %v2492_v30 = vmul.f32 %v439_v22, %v2221_v2 }
  0x49   :  { %2082 = vpow2.f32 %v326_v29  ;;  %v2495_v27 = vmul.f32 %v439_v22, %v2226_v3  ;;  %v2498_v54 = vmul.f32 %v439_v22, %v2231_v4  ;;  %v433_v61 = vadd.f32 %v432_v50, %v427_v35  ;;  %628 = vst.msk [vmem:[#allocation2 + $0x28] ss:$2 sm:$0x1f] %vm2473_vm7, %v625_v24 }
  0x4a   :  { %v2500_v62 = vadd.f32 %v432_v50, %v428_v37  ;;  %v2502_v63 = vadd.f32 %v432_v50, %v429_v23  ;;  %v436_v32 = vadd.f32 %v432_v50, %v430_v40  ;;  %v2506_v52 = vadd.f32 %v432_v50, %v431_v41  ;;  %630 = vst [vmem:[#allocation1 + $0x9] sm:$0xff] %v2221_v2 }
  0x4b   :  { %v2075_v55 = vpop.eup %2074  ;;  %v2509_v53 = vmul.f32 %v439_v22, %v2236_v5  ;;  %v450_v12 = vrot.slane %v440_v51, 1  ;;  %v451_v46 = vrot.slane %v2492_v30, 1  ;;  %v2515_v58 = vstv %s2477_s19  ;;  %631 = vst [vmem:[#allocation1 + $0x12] sm:$0xff] %v2226_v3 }
  0x4c   :  { %v2077_v7 = vpop.eup %2076  ;;  %v2504_v56 = vadd.f32 1.0, %v2075_v55  ;;  %v452_v34 = vrot.slane %v2495_v27, 1  ;;  %v453_v42 = vrot.slane %v2498_v54, 1  ;;  %v2538_v20 = vmul.f32 %v2515_v58, %v2215_v0  ;;  %632 = vst [vmem:[#allocation1 + $0x1b] sm:$0xff] %v2231_v4 }
  0x4d   :  { %v2079_v60 = vpop.eup %2078  ;;  %v2511_v36 = vadd.f32 1.0, %v2077_v7  ;;  %v454_v18 = vrot.slane %v2509_v53, 1  ;;  %v2534_v19 = vadd.f32 %v450_v12, %v433_v61  ;;  %v2582_v61 = vadd.f32 %v451_v46, %v2500_v62  ;;  %633 = vst [vmem:[#allocation1 + $0x24] sm:$0xff] %v2236_v5 }
  0x4e   :  { %v2081_v8 = vpop.eup %2080  ;;  %v2517_v33 = vadd.f32 1.0, %v2079_v60  ;;  %2084 = vrcp.f32 %v2504_v56  ;;  %v342_v6 = vand.u32 2147483647, %v2504_v56  ;;  %v344_v48 = vand.u32 2147483648, %v2504_v56 }
  0x4f   :  { %v2083_v1 = vpop.eup %2082  ;;  %v2522_v43 = vadd.f32 1.0, %v2081_v8  ;;  %2086 = vrcp.f32 %v2511_v36  ;;  %v357_v44 = vand.u32 2147483647, %v2511_v36  ;;  %v359_v16 = vand.u32 2147483648, %v2511_v36 }
  0x50   :  { %v2527_v10 = vadd.f32 1.0, %v2083_v1  ;;  %vm338_vm9 = vweird.f32 %v2504_v56  ;;  %2088 = vrcp.f32 %v2517_v33  ;;  %vm353_vm10 = vweird.f32 %v2511_v36 }
  0x51   :  { %v372_v17 = vand.u32 2147483647, %v2517_v33  ;;  %v374_v21 = vand.u32 2147483648, %v2517_v33  ;;  %2090 = vrcp.f32 %v2522_v43  ;;  %vm2544_vm11 = vcmp.eq.f32.partialorder %v342_v6, 8.507059e+37 }
  0x52   :  { %v2548_v26 = vor.u32 1.1754944e-38, %v344_v48  ;;  %vm368_vm12 = vweird.f32 %v2517_v33  ;;  %v387_v28 = vand.u32 2147483647, %v2522_v43  ;;  %v389_v29 = vand.u32 2147483648, %v2522_v43 }
  0x53   :  { %vm2554_vm13 = vcmp.eq.f32.partialorder %v357_v44, 8.507059e+37  ;;  %v360_v37 = vor.u32 1.1754944e-38, %v359_v16  ;;  %v2558_v38 = vor.u32 1.1754944e-38, %v374_v21  ;;  %vm383_vm14 = vweird.f32 %v2522_v43 }
  0x54   :  { %v2085_v31 = vpop.eup %2084  ;;  %2092 = vrcp.f32 %v2527_v10  ;;  %v402_v40 = vand.u32 2147483647, %v2527_v10  ;;  %vm2569_vm5 = vcmp.eq.f32.partialorder %v372_v17, 8.507059e+37  ;;  %v2573_v51 = vor.u32 1.1754944e-38, %v389_v29 }
  0x55   :  { %v2087_v23 = vpop.eup %2086  ;;  %v334_v22 = vmul.f32 %v2085_v31, %v2504_v56  ;;  %vm339_vm15 = vweird.f32 %v2085_v31  ;;  %v404_v30 = vand.u32 2147483648, %v2527_v10  ;;  %vm2577_vm8 = vcmp.eq.f32.partialorder %v387_v28, 8.507059e+37 }
  0x56   :  { %v349_v41 = vmul.f32 %v2087_v23, %v2511_v36  ;;  %vm354_vm1 = vweird.f32 %v2087_v23  ;;  %v2089_v27 = vpop.eup %2088  ;;  %v2585_v7 = vadd.f32 %v452_v34, %v2502_v63  ;;  %v2587_v53 = vadd.f32 %v453_v42, %v436_v32  ;;  %vm2601_vm6 = vmor %vm338_vm9, %vm339_vm15 }
  0x57   :  { %v335_v54 = vsub.f32 1.0, %v334_v22  ;;  %v2091_v60 = vpop.eup %2090  ;;  %v364_v8 = vmul.f32 %v2089_v27, %v2517_v33  ;;  %vm369_vm4 = vweird.f32 %v2089_v27  ;;  %v405_v1 = vor.u32 1.1754944e-38, %v404_v30  ;;  %vm2612_vm0 = vmor %vm353_vm10, %vm354_vm1 }
  0x58   :  { %v350_v12 = vsub.f32 1.0, %v349_v41  ;;  %v379_v48 = vmul.f32 %v2091_v60, %v2522_v43  ;;  %vm384_vm2 = vweird.f32 %v2091_v60  ;;  %vm2593_vm3 = vcmp.eq.f32.partialorder %v402_v40, 8.507059e+37  ;;  %vm2626_vm10 = vmor %vm368_vm12, %vm369_vm4 }
  0x59   :  { %v336_v6 = vmul.f32 %v2085_v31, %v335_v54  ;;  %v464_v63 = vadd.f32 %v454_v18, %v2506_v52  ;;  %v365_v42 = vsub.f32 1.0, %v364_v8  ;;  %v468_v44 = vmul.f32 %v2515_v58, %v2221_v2 }
  0x5a   :  { %v2093_v32 = vpop.eup %2092  ;;  %v351_v34 = vmul.f32 %v2087_v23, %v350_v12  ;;  %v469_v16 = vmul.f32 %v2515_v58, %v2226_v3  ;;  %v380_v56 = vsub.f32 1.0, %v379_v48  ;;  %v470_v28 = vmul.f32 %v2515_v58, %v2231_v4 }
  0x5b   :  { %v337_v17 = vadd.f32 %v2085_v31, %v336_v6  ;;  %v394_v18 = vmul.f32 %v2093_v32, %v2527_v10  ;;  %vm399_vm9 = vweird.f32 %v2093_v32  ;;  %v366_v24 = vmul.f32 %v2089_v27, %v365_v42 }
  0x5c   :  { %v352_v21 = vadd.f32 %v2087_v23, %v351_v34  ;;  %v471_v29 = vmul.f32 %v2515_v58, %v2236_v5  ;;  %v381_v40 = vmul.f32 %v2091_v60, %v380_v56  ;;  %v477_v30 = vrot.slane %v2538_v20, 2 }
  0x5d   :  { %v341_v22 = vsel %vm2601_vm6, %v2085_v31, %v337_v17  ;;  %v395_v41 = vsub.f32 1.0, %v394_v18  ;;  %v367_v12 = vadd.f32 %v2089_v27, %v366_v24  ;;  %vm2639_vm6 = vmor %vm383_vm14, %vm384_vm2  ;;  %v478_v31 = vrot.slane %v468_v44, 2 }
  0x5e   :  { %v346_v54 = vsel %vm2544_vm11, %v2548_v26, %v341_v22  ;;  %v356_v58 = vsel %vm2612_vm0, %v2087_v23, %v352_v21  ;;  %v382_v6 = vadd.f32 %v2091_v60, %v381_v40  ;;  %v635_v26 = vld [vmem:[#allocation1 + $0x2] ss:$9 sm:$0xff]  ;;  %vm3000_vm2 = vweird.f32 %v2527_v10 }
  0x5f   :  { %v347_v8 = vmul.f32 %v346_v54, %v2420_v45  ;;  %v361_v20 = vsel %vm2554_vm13, %v360_v37, %v356_v58  ;;  %v396_v25 = vmul.f32 %v2093_v32, %v395_v41  ;;  %v371_v23 = vsel %vm2626_vm10, %v2089_v27, %v367_v12  ;;  %vm2652_vm11 = vmor %vm3000_vm2, %vm399_vm9  ;;  %638 = vst.msk [vmem:[#allocation2 + $0x32] ss:$2 sm:$0x1f] %vm2473_vm7, %v635_v26 }
  0x60   :  { %v362_v48 = vmul.f32 %v361_v20, %v2423_v57  ;;  %v479_v46 = vrot.slane %v469_v16, 2  ;;  %v480_v45 = vrot.slane %v470_v28, 2  ;;  %v376_v35 = vsel %vm2569_vm5, %v2558_v38, %v371_v23  ;;  %807 = vst [vmem:[#allocation1] sm:$0xff] %v2403_v9 }
  0x61   :  { %v386_v57 = vsel %vm2639_vm6, %v2091_v60, %v382_v6  ;;  %v397_v37 = vadd.f32 %v2093_v32, %v396_v25  ;;  %v481_v27 = vrot.slane %v471_v29, 2  ;;  %v377_v10 = vmul.f32 %v376_v35, %v2431_v39  ;;  %808 = vst [vmem:[#allocation1 + $0x9] sm:$0xff] %v2408_v11 }
  0x62   :  { %v391_v34 = vsel %vm2577_vm8, %v2573_v51, %v386_v57  ;;  %v413_v42 = vrot.slane %v362_v48, 7  ;;  %v2669_v44 = vadd.f32 %v477_v30, %v2534_v19  ;;  %v2676_v60 = vadd.f32 %v478_v31, %v2582_v61  ;;  %809 = vst [vmem:[#allocation1 + $0x12] sm:$0xff] %v2434_v13 }
  0x63   :  { %v392_v38 = vmul.f32 %v391_v34, %v2441_v15  ;;  %v401_v50 = vsel %vm2652_vm11, %v2093_v32, %v397_v37  ;;  %v2679_v9 = vadd.f32 %v479_v46, %v2585_v7  ;;  %v414_v19 = vrot.slane %v377_v10, 6  ;;  %810 = vst [vmem:[#allocation1 + $0x1b] sm:$0xff] %v2446_v59 }
  0x64   :  { %v406_v39 = vsel %vm2593_vm3, %v405_v1, %v401_v50  ;;  %vm3003_vm12 = vcmask 1040384   ;;  %v2686_v11 = vadd.f32 %v480_v45, %v2587_v53  ;;  %v2690_v61 = vadd.f32 %v481_v27, %v464_v63  ;;  %811 = vst [vmem:[#allocation1 + $0x24] sm:$0xff] %v2463_v14 }
  0x65   :  { %v417_v51 = vsel %vm3003_vm12, %v347_v8, %v413_v42  ;;  %v407_v15 = vmul.f32 %v406_v39, %v2451_v47  ;;  %v415_v55 = vrot.slane %v392_v38, 5  ;;  %v492_v7 = vsub.f32 0.0, %v2669_v44  ;;  %vm3007_vm1 = vmmov %vm3003_vm12 }
  0x66   :  { %v493_v13 = vsub.f32 0.0, %v2676_v60  ;;  %v494_v1 = vsub.f32 0.0, %v2679_v9  ;;  %v495_v62 = vsub.f32 0.0, %v2686_v11  ;;  %vm3004_vm3 = vcmask 1041408  }
  0x67   :  { %v416_v32 = vrot.slane %v407_v15, 4  ;;  %v418_v53 = vsel %vm3004_vm3, %v417_v51, %v414_v19  ;;  %v496_v59 = vsub.f32 0.0, %v2690_v61  ;;  %v497_v16 = vmul.f32 1.442695, %v492_v7  ;;  %vm3015_vm11 = vmmov %vm3004_vm3 }
  0x68   :  { %v499_v47 = vmul.f32 1.442695, %v493_v13  ;;  %v501_v17 = vmul.f32 1.442695, %v494_v1  ;;  %v503_v63 = vmul.f32 1.442695, %v495_v62 }
  0x69   :  { %vm3005_vm13 = vcmask 1043459   ;;  %2094 = vpow2.f32 %v497_v16  ;;  %v505_v56 = vmul.f32 1.442695, %v496_v59  ;;  %vm3006_vm14 = vcmask 1042432  }
  0x6a   :  { %v419_v52 = vsel %vm3005_vm13, %v415_v55, %v416_v32  ;;  %2096 = vpow2.f32 %v499_v47  ;;  %v608_v41 = vrot.slane %v2221_v2, 7  ;;  %v610_v58 = vrot.slane %v2231_v4, 5  ;;  %vm3008_vm5 = vmmov %vm3005_vm13 }
  0x6b   :  { %v420_v14 = vsel %vm3006_vm14, %v418_v53, %v419_v52  ;;  %2098 = vpow2.f32 %v501_v17  ;;  %v813_v18 = vld [vmem:[#allocation1 + $0x3] ss:$9 sm:$0xff]  ;;  %v611_v12 = vrot.slane %v2236_v5, 4  ;;  %v609_v26 = vrot.slane %v2226_v3, 6  ;;  %vm3016_vm13 = vmmov %vm3006_vm14 }
  0x6c   :  { %423 = vst.msk [vmem:[#allocation2 + $0xa] ss:$2 sm:$0x1f] %vm2473_vm7, %v420_v14  ;;  %2100 = vpow2.f32 %v503_v63 }
  0x6d   :  { %2102 = vpow2.f32 %v505_v56  ;;  %816 = vst.msk [vmem:[#allocation2 + $0x1] ss:$2 sm:$0x1f] %vm2473_vm7, %v813_v18  ;;  %v614_v23 = vsel %vm3008_vm5, %v610_v58, %v611_v12 }
  0x6e   :  { %985 = vst [vmem:[#allocation1] sm:$0xff] %v347_v8 }
  0x6f   :  { %v2095_v21 = vpop.eup %2094  ;;  %986 = vst [vmem:[#allocation1 + $0x9] sm:$0xff] %v362_v48  ;;  %v612_v48 = vsel %vm3007_vm1, %v2215_v0, %v608_v41 }
  0x70   :  { %v2097_v24 = vpop.eup %2096  ;;  %v507_v28 = vadd.f32 1.0, %v2095_v21  ;;  %987 = vst [vmem:[#allocation1 + $0x12] sm:$0xff] %v377_v10 }
  0x71   :  { %v2099_v29 = vpop.eup %2098  ;;  %v2705_v22 = vadd.f32 1.0, %v2097_v24  ;;  %988 = vst [vmem:[#allocation1 + $0x1b] sm:$0xff] %v392_v38 }
  0x72   :  { %v2101_v36 = vpop.eup %2100  ;;  %v2707_v40 = vadd.f32 1.0, %v2099_v29  ;;  %2104 = vrcp.f32 %v507_v28  ;;  %989 = vst [vmem:[#allocation1 + $0x24] sm:$0xff] %v407_v15  ;;  %v521_v31 = vand.u32 2147483647, %v507_v28  ;;  %v523_v8 = vand.u32 2147483648, %v507_v28 }
  0x73   :  { %v2103_v30 = vpop.eup %2102  ;;  %v2710_v54 = vadd.f32 1.0, %v2101_v36  ;;  %2106 = vrcp.f32 %v2705_v22  ;;  %v536_v20 = vand.u32 2147483647, %v2705_v22  ;;  %v538_v6 = vand.u32 2147483648, %v2705_v22 }
  0x74   :  { %v2715_v33 = vadd.f32 1.0, %v2103_v30  ;;  %2108 = vrcp.f32 %v2707_v40  ;;  %v551_v25 = vand.u32 2147483647, %v2707_v40  ;;  %vm517_vm15 = vweird.f32 %v507_v28 }
  0x75   :  { %2110 = vrcp.f32 %v2710_v54  ;;  %vm532_vm0 = vweird.f32 %v2705_v22  ;;  %vm2727_vm8 = vcmp.eq.f32.partialorder %v521_v31, 8.507059e+37  ;;  %v524_v45 = vor.u32 1.1754944e-38, %v523_v8 }
  0x76   :  { %v553_v35 = vand.u32 2147483648, %v2707_v40  ;;  %2112 = vrcp.f32 %v2715_v33  ;;  %vm2733_vm4 = vcmp.eq.f32.partialorder %v536_v20, 8.507059e+37  ;;  %v539_v10 = vor.u32 1.1754944e-38, %v538_v6 }
  0x77   :  { %vm547_vm9 = vweird.f32 %v2707_v40  ;;  %vm2739_vm10 = vcmp.eq.f32.partialorder %v551_v25, 8.507059e+37  ;;  %vm562_vm6 = vweird.f32 %v2710_v54  ;;  %v566_v50 = vand.u32 2147483647, %v2710_v54 }
  0x78   :  { %v2105_v43 = vpop.eup %2104  ;;  %v568_v51 = vand.u32 2147483648, %v2710_v54  ;;  %v613_v15 = vsel %vm3015_vm11, %v612_v48, %v609_v26  ;;  %v554_v1 = vor.u32 1.1754944e-38, %v553_v35  ;;  %vm577_vm3 = vweird.f32 %v2715_v33 }
  0x79   :  { %v2107_v57 = vpop.eup %2106  ;;  %v513_v37 = vmul.f32 %v2105_v43, %v507_v28  ;;  %v991_v34 = vld [vmem:[#allocation1 + $0x3] ss:$9 sm:$0xff]  ;;  %vm518_vm2 = vweird.f32 %v2105_v43  ;;  %v615_v53 = vsel %vm3016_vm13, %v613_v15, %v614_v23  ;;  %v581_v63 = vand.u32 2147483647, %v2715_v33 }
  0x7a   :  { %v528_v42 = vmul.f32 %v2107_v57, %v2705_v22  ;;  %994 = vst.msk [vmem:[#allocation2 + $0xb] ss:$2 sm:$0x1f] %vm2473_vm7, %v991_v34  ;;  %v2109_v39 = vpop.eup %2108  ;;  %vm533_vm12 = vweird.f32 %v2107_v57  ;;  %vm2754_vm14 = vmor %vm517_vm15, %vm518_vm2  ;;  %vm2769_vm2 = vcmp.eq.f32.partialorder %v566_v50, 8.507059e+37  ;;  %v583_v29 = vand.u32 2147483648, %v2715_v33 }
  0x7b   :  { %v514_v19 = vsub.f32 1.0, %v513_v37  ;;  %v2111_v55 = vpop.eup %2110  ;;  %v543_v13 = vmul.f32 %v2109_v39, %v2707_v40  ;;  %vm548_vm1 = vweird.f32 %v2109_v39  ;;  %618 = vst.msk [vmem:[#allocation2 + $0x1e] ss:$2 sm:$0x1f] %vm2473_vm7, %v615_v53  ;;  %vm2764_vm5 = vmor %vm532_vm0, %vm533_vm12  ;;  %v569_v40 = vor.u32 1.1754944e-38, %v568_v51  ;;  %v1203_v51 = vld [vmem:[#allocation2] sm:$0xff] }
  0x7c   :  { %v529_v7 = vsub.f32 1.0, %v528_v42  ;;  %v558_v32 = vmul.f32 %v2111_v55, %v2710_v54  ;;  %v2113_v59 = vpop.eup %2112  ;;  %vm563_vm15 = vweird.f32 %v2111_v55  ;;  %vm2778_vm0 = vmor %vm547_vm9, %vm548_vm1  ;;  %v584_v54 = vor.u32 1.1754944e-38, %v583_v29 }
  0x7d   :  { %v515_v62 = vmul.f32 %v2105_v43, %v514_v19  ;;  %v544_v17 = vsub.f32 1.0, %v543_v13  ;;  %v573_v18 = vmul.f32 %v2113_v59, %v2715_v33  ;;  %vm578_vm11 = vweird.f32 %v2113_v59  ;;  %vm2788_vm12 = vmor %vm562_vm6, %vm563_vm15 }
  0x7e   :  { %v530_v47 = vmul.f32 %v2107_v57, %v529_v7  ;;  %v559_v14 = vsub.f32 1.0, %v558_v32  ;;  %vm582_vm9 = vcmp.eq.f32.partialorder %v581_v63, 8.507059e+37  ;;  %vm3029_vm6 = vcmask 1043459  }
  0x7f   :  { %v516_v52 = vadd.f32 %v2105_v43, %v515_v62  ;;  %v545_v24 = vmul.f32 %v2109_v39, %v544_v17  ;;  %v574_v30 = vsub.f32 1.0, %v573_v18 }
  0x80   :  { %v531_v21 = vadd.f32 %v2107_v57, %v530_v47  ;;  %v560_v41 = vmul.f32 %v2111_v55, %v559_v14 }
  0x81   :  { %v520_v36 = vsel %vm2754_vm14, %v2105_v43, %v516_v52  ;;  %v546_v31 = vadd.f32 %v2109_v39, %v545_v24  ;;  %v575_v26 = vmul.f32 %v2113_v59, %v574_v30  ;;  %v1204_v15 = vld [vmem:[#allocation2 + $0x8] sm:$0xff] }
  0x82   :  { %v525_v58 = vsel %vm2727_vm8, %v524_v45, %v520_v36  ;;  %v535_v12 = vsel %vm2764_vm5, %v2107_v57, %v531_v21  ;;  %v561_v25 = vadd.f32 %v2111_v55, %v560_v41  ;;  %vm579_vm8 = vmor %vm577_vm3, %vm578_vm11 }
  0x83   :  { %v526_v20 = vmul.f32 %v525_v58, %v2669_v44  ;;  %v540_v6 = vsel %vm2733_vm4, %v539_v10, %v535_v12  ;;  %v550_v23 = vsel %vm2778_vm0, %v2109_v39, %v546_v31  ;;  %v576_v46 = vadd.f32 %v2113_v59, %v575_v26  ;;  %vm3030_vm3 = vmmov %vm3016_vm13  ;;  %v1211_v12 = vld [vmem:[%s2952_s3] sm:$0xff] }
  0x84   :  { %v541_v48 = vmul.f32 %v540_v6, %v2676_v60  ;;  %v555_v43 = vsel %vm2739_vm10, %v554_v1, %v550_v23  ;;  %v565_v44 = vsel %vm2788_vm12, %v2111_v55, %v561_v25  ;;  %vm3027_vm4 = vcmask 1040384   ;;  %v1212_v6 = vld [vmem:[%s2952_s3 + $0x8] sm:$0xff] }
  0x85   :  { %1163 = vst [vmem:[#allocation1] sm:$0xff] %v526_v20  ;;  %v556_v45 = vmul.f32 %v555_v43, %v2679_v9  ;;  %v570_v60 = vsel %vm2769_vm2, %v569_v40, %v565_v44  ;;  %v580_v57 = vsel %vm579_vm8, %v2113_v59, %v576_v46  ;;  %vm3028_vm10 = vcmask 1041408   ;;  %v1214_v46 = vld [vmem:[%s2952_s3 + $0x18] sm:$0xff] }
  0x86   :  { %v592_v35 = vrot.slane %v541_v48, 7  ;;  %1164 = vst [vmem:[#allocation1 + $0x9] sm:$0xff] %v541_v48  ;;  %v571_v33 = vmul.f32 %v570_v60, %v2686_v11  ;;  %v585_v37 = vsel %vm582_vm9, %v584_v54, %v580_v57  ;;  %v1213_v48 = vld [vmem:[%s2952_s3 + $0x10] sm:$0xff]  ;;  %v1215_v57 = vld [vmem:[%s2952_s3 + $0x20] sm:$0xff] }
  0x87   :  { %v593_v27 = vrot.slane %v556_v45, 6  ;;  %1165 = vst [vmem:[#allocation1 + $0x12] sm:$0xff] %v556_v45  ;;  %v586_v34 = vmul.f32 %v585_v37, %v2690_v61 }
  0x88   :  { %v596_v10 = vsel %vm3027_vm4, %v526_v20, %v592_v35  ;;  %v594_v42 = vrot.slane %v571_v33, 5  ;;  %1166 = vst [vmem:[#allocation1 + $0x1b] sm:$0xff] %v571_v33 }
  0x89   :  { %v595_v38 = vrot.slane %v586_v34, 4  ;;  %v597_v9 = vsel %vm3028_vm10, %v596_v10, %v593_v27  ;;  %1167 = vst [vmem:[#allocation1 + $0x24] sm:$0xff] %v586_v34 }
  0x8b   :  { %v598_v50 = vsel %vm3029_vm6, %v594_v42, %v595_v38  ;;  %v1216_v42 = vld [vmem:[%s2952_s3 + $0x28] sm:$0xff] }
  0x8c   :  { %v599_v39 = vsel %vm3030_vm3, %v597_v9, %v598_v50 }
  0x8d   :  { %602 = vst.msk [vmem:[#allocation2 + $0x14] ss:$2 sm:$0x1f] %vm2473_vm7, %v599_v39 }
  0x90   :  { %v1169_v11 = vld [vmem:[#allocation1 + $0x3] ss:$9 sm:$0xff] }
  0x91   :  { %1172 = vst.msk [vmem:[#allocation2 + $0x15] ss:$2 sm:$0x1f] %vm2473_vm7, %v1169_v11  ;;  %v1217_v11 = vld [vmem:[%s2952_s3 + $0x30] sm:$0xff] }
  0x92   :  { %1173 = vst [vmem:[#allocation1] sm:$0xff] %v2215_v0 }
  0x93   :  { %1174 = vst [vmem:[#allocation1 + $0x9] sm:$0xff] %v2221_v2 }
  0x94   :  { %1175 = vst [vmem:[#allocation1 + $0x12] sm:$0xff] %v2226_v3 }
  0x95   :  { %1176 = vst [vmem:[#allocation1 + $0x1b] sm:$0xff] %v2231_v4 }
  0x96   :  { %1177 = vst [vmem:[#allocation1 + $0x24] sm:$0xff] %v2236_v5 }
  0x98   :  { %v1205_v7 = vld [vmem:[#allocation2 + $0x10] sm:$0xff] }
  0x9d   :  { %v1179_v61 = vld [vmem:[#allocation1 + $0x3] ss:$9 sm:$0xff] }
  0x9e   :  { %1182 = vst.msk [vmem:[#allocation2 + $0x1f] ss:$2 sm:$0x1f] %vm2473_vm7, %v1179_v61 }
  0x9f   :  { %1183 = vst [vmem:[#allocation1] sm:$0xff] %v2215_v0 }
  0xa0   :  { %1184 = vst [vmem:[#allocation1 + $0x9] sm:$0xff] %v2221_v2 }
  0xa1   :  { %1185 = vst [vmem:[#allocation1 + $0x12] sm:$0xff] %v2226_v3 }
  0xa2   :  { %1186 = vst [vmem:[#allocation1 + $0x1b] sm:$0xff] %v2231_v4 }
  0xa3   :  { %1187 = vst [vmem:[#allocation1 + $0x24] sm:$0xff] %v2236_v5 }
  0xa5   :  { %v1207_v53 = vld [vmem:[#allocation2 + $0x20] sm:$0xff] }
  0xaa   :  { %v1189_v19 = vld [vmem:[#allocation1 + $0x4] ss:$9 sm:$0xff] }
  0xab   :  { %1192 = vst.msk [vmem:[#allocation2 + $0x29] ss:$2 sm:$0x1f] %vm2473_vm7, %v1189_v19 }
  0xac   :  { %1193 = vst [vmem:[#allocation1] sm:$0xff] %v2215_v0 }
  0xad   :  { %1194 = vst [vmem:[#allocation1 + $0x9] sm:$0xff] %v2221_v2  ;;  %v1206_v2 = vld [vmem:[#allocation2 + $0x18] sm:$0xff] }
  0xae   :  { %1195 = vst [vmem:[#allocation1 + $0x12] sm:$0xff] %v2226_v3 }
  0xaf   :  { %1196 = vst [vmem:[#allocation1 + $0x1b] sm:$0xff] %v2231_v4 }
  0xb0   :  { %1197 = vst [vmem:[#allocation1 + $0x24] sm:$0xff] %v2236_v5 }
  0xb1   :  { %1231 = vst [vmem:[#allocation1] ss:$4 sm:$0xff] %v1203_v51 }
  0xb2   :  { %v1208_v17 = vld [vmem:[#allocation2 + $0x28] sm:$0xff] }
  0xb7   :  { %v1199_v55 = vld [vmem:[#allocation1 + $0x5] ss:$9 sm:$0xff] }
  0xb8   :  { %1202 = vst.msk [vmem:[#allocation2 + $0x33] ss:$2 sm:$0x1f] %vm2473_vm7, %v1199_v55  ;;  %v1234_v13 = vld.sshfl [vmem:[#allocation1] sm:$0xff pattern:$0x73625140] }
  0xb9   :  { %1233 = vst [vmem:[#allocation1 + $0x20] ss:$4 sm:$0xff] %v1204_v15  ;;  %v1235_v1 = vld.sshfl [vmem:[#allocation1 + $0x8] sm:$0xff pattern:$0x73625140]  ;;  %vm1977_vm7 = vcmask 9216  }
  0xba   :  { %v1236_v0 = vld.sshfl [vmem:[#allocation1 + $0x10] sm:$0xff pattern:$0x73625140]  ;;  %v1237_v62 = vld.sshfl [vmem:[#allocation1 + $0x18] sm:$0xff pattern:$0x73625140] }
  0xbb   :  { %1242 = vst [vmem:[#allocation1] ss:$4 sm:$0xff] %v1205_v7  ;;  %v1218_v55 = vld [vmem:[%s2952_s3 + $0x38] sm:$0xf] }
  0xbf   :  { %v1209_v18 = vld [vmem:[#allocation2 + $0x30] sm:$0xff]  ;;  %v1210_v36 = vld [vmem:[#allocation2 + $0x38] sm:$0xf] }
  0xc0   :  { %v2838_v3 = vld.sshfl [vmem:[#allocation1 + $0x20] sm:$0xff pattern:$0x73625140]  ;;  %v2840_v32 = vld.sshfl [vmem:[#allocation1 + $0x28] sm:$0xff pattern:$0x73625140] }
  0xc1   :  { %v2842_v4 = vld.sshfl [vmem:[#allocation1 + $0x30] sm:$0xff pattern:$0x73625140]  ;;  %v2844_v5 = vld.sshfl [vmem:[#allocation1 + $0x38] sm:$0xff pattern:$0x73625140] }
  0xc2   :  { %1243 = vst [vmem:[#allocation1 + $0x20] ss:$4 sm:$0xff] %v1206_v2  ;;  %v2846_v59 = vld.sshfl [vmem:[#allocation1] sm:$0xff pattern:$0x73625140] }
  0xc3   :  { %v2848_v49 = vld.sshfl [vmem:[#allocation1 + $0x8] sm:$0xff pattern:$0x73625140]  ;;  %v2850_v16 = vld.sshfl [vmem:[#allocation1 + $0x10] sm:$0xff pattern:$0x73625140] }
  0xc4   :  { %v2852_v47 = vld.sshfl [vmem:[#allocation1 + $0x18] sm:$0xff pattern:$0x73625140] }
  0xc5   :  { %1252 = vst [vmem:[#allocation1] ss:$4 sm:$0xff] %v1207_v53  ;;  %v2053_v53 = vld [vmem:[%s2953_s4] ss:$0 sm:$0xff]  ;;  %s2175_s4 = smov [#allocation8]  }
  0xc6   :  { %s2016_s10 = sshll.u32 %s2175_s4, 4  ;;  %s2017_s10 = int_to_ptr.vmem [resolvable:$true] %s2016_s10 }
  0xc9   :  { %v2854_v63 = vld.sshfl [vmem:[#allocation1 + $0x20] sm:$0xff pattern:$0x73625140]  ;;  %v2856_v52 = vld.sshfl [vmem:[#allocation1 + $0x28] sm:$0xff pattern:$0x73625140] }
  0xca   :  { %v2858_v56 = vld.sshfl [vmem:[#allocation1 + $0x30] sm:$0xff pattern:$0x73625140]  ;;  %v2860_v14 = vld.sshfl [vmem:[#allocation1 + $0x38] sm:$0xff pattern:$0x73625140] }
  0xcb   :  { %1253 = vst [vmem:[#allocation1 + $0x20] ss:$4 sm:$0xff] %v1208_v17 }
  0xcc   :  { %v2862_v21 = vld.sshfl [vmem:[#allocation1] sm:$0xff pattern:$0x73625140]  ;;  %v2864_v24 = vld.sshfl [vmem:[#allocation1 + $0x8] sm:$0xff pattern:$0x73625140] }
  0xcd   :  { %v2866_v28 = vld.sshfl [vmem:[#allocation1 + $0x10] sm:$0xff pattern:$0x73625140]  ;;  %v2868_v29 = vld.sshfl [vmem:[#allocation1 + $0x18] sm:$0xff pattern:$0x73625140] }
  0xce   :  { %1262 = vst [vmem:[#allocation1] ss:$4 sm:$0xff] %v1209_v18 }
  0xd2   :  { %v2870_v22 = vld.sshfl [vmem:[#allocation1 + $0x20] sm:$0xff pattern:$0x73625140]  ;;  %v2872_v41 = vld.sshfl [vmem:[#allocation1 + $0x28] sm:$0xff pattern:$0x73625140] }
  0xd3   :  { %v2874_v30 = vld.sshfl [vmem:[#allocation1 + $0x30] sm:$0xff pattern:$0x73625140]  ;;  %v2876_v58 = vld.sshfl [vmem:[#allocation1 + $0x38] sm:$0xff pattern:$0x73625140] }
  0xd4   :  { %1263 = vst [vmem:[#allocation1 + $0x20] ss:$4 sm:$0xff] %v1210_v36 }
  0xd5   :  { %v2881_v31 = vld.sshfl [vmem:[#allocation1] sm:$0xff pattern:$0x73625140]  ;;  %v2883_v8 = vld.sshfl [vmem:[#allocation1 + $0x8] sm:$0xff pattern:$0x73625140] }
  0xd6   :  { %v2885_v40 = vld.sshfl [vmem:[#allocation1 + $0x10] sm:$0xff pattern:$0x73625140]  ;;  %v2887_v20 = vld.sshfl [vmem:[#allocation1 + $0x18] sm:$0xff pattern:$0x73625140] }
  0xd7   :  { %1308 = vst [vmem:[#allocation1] ss:$4 sm:$0xff] %v1211_v12 }
  0xdb   :  { %v2892_v25 = vld.sshfl [vmem:[#allocation1 + $0x20] sm:$0xff pattern:$0x73625140]  ;;  %v2894_v26 = vld.sshfl [vmem:[#allocation1 + $0x28] sm:$0xff pattern:$0x73625140] }
  0xdc   :  { %1310 = vst [vmem:[#allocation1 + $0x20] ss:$4 sm:$0xff] %v1212_v6 }
  0xde   :  { %v1313_v23 = vld.sshfl [vmem:[#allocation1 + $0x10] sm:$0xff pattern:$0x73625140]  ;;  %v1311_v54 = vld.sshfl [vmem:[#allocation1] sm:$0xff pattern:$0x73625140] }
  0xdf   :  { %1432 = vmatpush.xpose.msra.mxu2 %v1313_v23  ;;  %1392 = vmatpush.xpose.msra.mxu0 %v1311_v54  ;;  %v1314_v43 = vld.sshfl [vmem:[#allocation1 + $0x18] sm:$0xff pattern:$0x73625140]  ;;  %v1312_v44 = vld.sshfl [vmem:[#allocation1 + $0x8] sm:$0xff pattern:$0x73625140] }
  0xe0   :  { %1452 = vmatpush.xpose.msra.mxu3 %v1314_v43  ;;  %1412 = vmatpush.xpose.msra.mxu1 %v1312_v44  ;;  %1319 = vst [vmem:[#allocation1] ss:$4 sm:$0xff] %v1213_v48 }
  0xe2   :  { %1433 = vmatmul.f32.vlgmr.msra.gmra.mxu2 %v1236_v0  ;;  %1393 = vmatmul.f32.vlgmr.msra.gmra.mxu0 %v1234_v13 }
  0xe3   :  { %1453 = vmatmul.f32.vlgmr.msra.gmra.mxu3 %v1237_v62  ;;  %1413 = vmatmul.f32.vlgmr.msra.gmra.mxu1 %v1235_v1  ;;  %v1317_v45 = vld.sshfl [vmem:[#allocation1 + $0x30] sm:$0xff pattern:$0x73625140]  ;;  %v1315_v60 = vld.sshfl [vmem:[#allocation1 + $0x20] sm:$0xff pattern:$0x73625140] }
  0xe4   :  { %1512 = vmatpush.xpose.msrb.mxu2 %v1317_v45  ;;  %1472 = vmatpush.xpose.msrb.mxu0 %v1315_v60  ;;  %v1318_v35 = vld.sshfl [vmem:[#allocation1 + $0x38] sm:$0xff pattern:$0x73625140]  ;;  %v1316_v33 = vld.sshfl [vmem:[#allocation1 + $0x28] sm:$0xff pattern:$0x73625140] }
  0xe5   :  { %1532 = vmatpush.xpose.msrb.mxu3 %v1318_v35  ;;  %1492 = vmatpush.xpose.msrb.mxu1 %v1316_v33  ;;  %1320 = vst [vmem:[#allocation1 + $0x20] ss:$4 sm:$0xff] %v1214_v46 }
  0xe7   :  { %v1323_v37 = vld.sshfl [vmem:[#allocation1 + $0x10] sm:$0xff pattern:$0x73625140]  ;;  %v1321_v27 = vld.sshfl [vmem:[#allocation1] sm:$0xff pattern:$0x73625140] }
  0xe8   :  { %1592 = vmatpush.xpose.msra.mxu2 %v1323_v37  ;;  %1552 = vmatpush.xpose.msra.mxu0 %v1321_v27  ;;  %v1324_v10 = vld.sshfl [vmem:[#allocation1 + $0x18] sm:$0xff pattern:$0x73625140]  ;;  %v1322_v34 = vld.sshfl [vmem:[#allocation1 + $0x8] sm:$0xff pattern:$0x73625140] }
  0xe9   :  { %1612 = vmatpush.xpose.msra.mxu3 %v1324_v10  ;;  %1572 = vmatpush.xpose.msra.mxu1 %v1322_v34  ;;  %1329 = vst [vmem:[#allocation1] ss:$4 sm:$0xff] %v1215_v57 }
  0xea   :  { %1513 = vmatmul.f32.vlgmr.msrb.gmra.mxu2 %v2842_v4  ;;  %1473 = vmatmul.f32.vlgmr.msrb.gmra.mxu0 %v2838_v3 }
  0xeb   :  { %1533 = vmatmul.f32.vlgmr.msrb.gmra.mxu3 %v2844_v5  ;;  %1493 = vmatmul.f32.vlgmr.msrb.gmra.mxu1 %v2840_v32 }
  0xec   :  { %v1327_v38 = vld.sshfl [vmem:[#allocation1 + $0x30] sm:$0xff pattern:$0x73625140]  ;;  %v1325_v9 = vld.sshfl [vmem:[#allocation1 + $0x20] sm:$0xff pattern:$0x73625140] }
  0xed   :  { %1672 = vmatpush.xpose.msrb.mxu2 %v1327_v38  ;;  %1632 = vmatpush.xpose.msrb.mxu0 %v1325_v9  ;;  %v1328_v50 = vld.sshfl [vmem:[#allocation1 + $0x38] sm:$0xff pattern:$0x73625140]  ;;  %v1326_v39 = vld.sshfl [vmem:[#allocation1 + $0x28] sm:$0xff pattern:$0x73625140] }
  0xee   :  { %1692 = vmatpush.xpose.msrb.mxu3 %v1328_v50  ;;  %1652 = vmatpush.xpose.msrb.mxu1 %v1326_v39  ;;  %1330 = vst [vmem:[#allocation1 + $0x20] ss:$4 sm:$0xff] %v1216_v42 }
  0xf0   :  { %v1333_v61 = vld.sshfl [vmem:[#allocation1 + $0x10] sm:$0xff pattern:$0x73625140]  ;;  %v1331_v19 = vld.sshfl [vmem:[#allocation1] sm:$0xff pattern:$0x73625140] }
  0xf1   :  { %v1334_v51 = vld.sshfl [vmem:[#allocation1 + $0x18] sm:$0xff pattern:$0x73625140]  ;;  %v1332_v15 = vld.sshfl [vmem:[#allocation1 + $0x8] sm:$0xff pattern:$0x73625140] }
  0xf2   :  { %1593 = vmatmul.f32.vlgmr.msra.gmra.mxu2 %v2850_v16  ;;  %1553 = vmatmul.f32.vlgmr.msra.gmra.mxu0 %v2846_v59  ;;  %1339 = vst [vmem:[#allocation1] ss:$4 sm:$0xff] %v1217_v11 }
  0xf3   :  { %1613 = vmatmul.f32.vlgmr.msra.gmra.mxu3 %v2852_v47  ;;  %1573 = vmatmul.f32.vlgmr.msra.gmra.mxu1 %v2848_v49 }
  0xf4   :  { %1752 = vmatpush.xpose.msra.mxu2 %v1333_v61  ;;  %1712 = vmatpush.xpose.msra.mxu0 %v1331_v19 }
  0xf5   :  { %1772 = vmatpush.xpose.msra.mxu3 %v1334_v51  ;;  %1732 = vmatpush.xpose.msra.mxu1 %v1332_v15  ;;  %v1337_v7 = vld.sshfl [vmem:[#allocation1 + $0x30] sm:$0xff pattern:$0x73625140]  ;;  %v1335_v13 = vld.sshfl [vmem:[#allocation1 + $0x20] sm:$0xff pattern:$0x73625140] }
  0xf6   :  { %v1338_v1 = vld.sshfl [vmem:[#allocation1 + $0x38] sm:$0xff pattern:$0x73625140]  ;;  %v1336_v0 = vld.sshfl [vmem:[#allocation1 + $0x28] sm:$0xff pattern:$0x73625140] }
  0xf7   :  { %1340 = vst [vmem:[#allocation1 + $0x20] ss:$4 sm:$0xff] %v1218_v55 }
  0xf9   :  { %v1343_v62 = vld.sshfl [vmem:[#allocation1 + $0x10] sm:$0xff pattern:$0x73625140]  ;;  %v1341_v2 = vld.sshfl [vmem:[#allocation1] sm:$0xff pattern:$0x73625140] }
  0xfa   :  { %1673 = vmatmul.f32.vlgmr.msrb.gmra.mxu2 %v2858_v56  ;;  %1633 = vmatmul.f32.vlgmr.msrb.gmra.mxu0 %v2854_v63  ;;  %v1344_v3 = vld.sshfl [vmem:[#allocation1 + $0x18] sm:$0xff pattern:$0x73625140]  ;;  %v1342_v32 = vld.sshfl [vmem:[#allocation1 + $0x8] sm:$0xff pattern:$0x73625140] }
  0xfb   :  { %1693 = vmatmul.f32.vlgmr.msrb.gmra.mxu3 %v2860_v14  ;;  %1653 = vmatmul.f32.vlgmr.msrb.gmra.mxu1 %v2856_v52 }
  0xfc   :  { %1832 = vmatpush.xpose.msrb.mxu2 %v1337_v7  ;;  %1792 = vmatpush.xpose.msrb.mxu0 %v1335_v13 }
  0xfd   :  { %1852 = vmatpush.xpose.msrb.mxu3 %v1338_v1  ;;  %1812 = vmatpush.xpose.msrb.mxu1 %v1336_v0 }
  0xfe   :  { %v1345_v4 = vld.sshfl [vmem:[#allocation1 + $0x20] sm:$0xff pattern:$0x73625140]  ;;  %v1346_v5 = vld.sshfl [vmem:[#allocation1 + $0x28] sm:$0xff pattern:$0x73625140] }
 0x102   :  { %1753 = vmatmul.f32.vlgmr.msra.gmra.mxu2 %v2866_v28  ;;  %1713 = vmatmul.f32.vlgmr.msra.gmra.mxu0 %v2862_v21 }
 0x103   :  { %1773 = vmatmul.f32.vlgmr.msra.gmra.mxu3 %v2868_v29  ;;  %1733 = vmatmul.f32.vlgmr.msra.gmra.mxu1 %v2864_v24 }
 0x104   :  { %1912 = vmatpush.xpose.msra.mxu2 %v1343_v62  ;;  %1872 = vmatpush.xpose.msra.mxu0 %v1341_v2 }
 0x105   :  { %1932 = vmatpush.xpose.msra.mxu3 %v1344_v3  ;;  %1892 = vmatpush.xpose.msra.mxu1 %v1342_v32 }
 0x10a   :  { %1833 = vmatmul.f32.vlgmr.msrb.gmra.mxu2 %v2874_v30  ;;  %1793 = vmatmul.f32.vlgmr.msrb.gmra.mxu0 %v2870_v22 }
 0x10b   :  { %1853 = vmatmul.f32.vlgmr.msrb.gmra.mxu3 %v2876_v58  ;;  %1813 = vmatmul.f32.vlgmr.msrb.gmra.mxu1 %v2872_v41 }
 0x10c   :  { %1952 = vmatpush.xpose.msrb.mxu0 %v1345_v4  ;;  %1972 = vmatpush.xpose.msrb.mxu1 %v1346_v5 }
 0x112   :  { %1913 = vmatmul.f32.vlgmr.msra.gmra.mxu2 %v2885_v40  ;;  %1873 = vmatmul.f32.vlgmr.msra.gmra.mxu0 %v2881_v31 }
 0x113   :  { %1933 = vmatmul.f32.vlgmr.msra.gmra.mxu3 %v2887_v20  ;;  %1893 = vmatmul.f32.vlgmr.msra.gmra.mxu1 %v2883_v8 }
 0x11a   :  { %1953 = vmatmul.f32.vlgmr.msrb.gmra.mxu0 %v2892_v25 }
 0x11b   :  { %1973 = vmatmul.f32.vlgmr.msrb.gmra.mxu1 %v2894_v26 }
 0x15f   :  { %v1394_v59 = vpop.f32.mrf.mxu0 }
 0x160   :  { %v1395_v49 = vadd.f32 %v2053_v53, %v1394_v59  ;;  %v1414_v16 = vpop.f32.mrf.mxu1 }
 0x162   :  { %v1415_v47 = vadd.f32 %v1414_v16, %v1395_v49 }
 0x165   :  { %v1434_v17 = vpop.f32.mrf.mxu2 }
 0x166   :  { %v1435_v63 = vadd.f32 %v1434_v17, %v1415_v47  ;;  %v1454_v52 = vpop.f32.mrf.mxu3 }
 0x167   :  { %v1474_v56 = vpop.f32.mrf.mxu0 }
 0x168   :  { %v1455_v14 = vadd.f32 %v1454_v52, %v1435_v63  ;;  %v1494_v18 = vpop.f32.mrf.mxu1 }
 0x16a   :  { %v1475_v21 = vadd.f32 %v1474_v56, %v1455_v14 }
 0x16c   :  { %v1495_v24 = vadd.f32 %v1494_v18, %v1475_v21 }
 0x16d   :  { %v1514_v28 = vpop.f32.mrf.mxu2 }
 0x16e   :  { %v1515_v29 = vadd.f32 %v1514_v28, %v1495_v24  ;;  %v1534_v36 = vpop.f32.mrf.mxu3 }
 0x16f   :  { %v1554_v22 = vpop.f32.mrf.mxu0 }
 0x170   :  { %v1535_v41 = vadd.f32 %v1534_v36, %v1515_v29  ;;  %v1574_v30 = vpop.f32.mrf.mxu1 }
 0x172   :  { %v1555_v58 = vadd.f32 %v1554_v22, %v1535_v41 }
 0x174   :  { %v1575_v12 = vadd.f32 %v1574_v30, %v1555_v58 }
 0x175   :  { %v1594_v31 = vpop.f32.mrf.mxu2 }
 0x176   :  { %v1595_v8 = vadd.f32 %v1594_v31, %v1575_v12  ;;  %v1614_v40 = vpop.f32.mrf.mxu3 }
 0x177   :  { %v1634_v20 = vpop.f32.mrf.mxu0 }
 0x178   :  { %v1615_v6 = vadd.f32 %v1614_v40, %v1595_v8  ;;  %v1654_v25 = vpop.f32.mrf.mxu1 }
 0x17a   :  { %v1635_v26 = vadd.f32 %v1634_v20, %v1615_v6 }
 0x17c   :  { %v1655_v48 = vadd.f32 %v1654_v25, %v1635_v26 }
 0x17d   :  { %v1674_v23 = vpop.f32.mrf.mxu2 }
 0x17e   :  { %v1675_v54 = vadd.f32 %v1674_v23, %v1655_v48  ;;  %v1694_v43 = vpop.f32.mrf.mxu3 }
 0x17f   :  { %v1714_v44 = vpop.f32.mrf.mxu0 }
 0x180   :  { %v1695_v46 = vadd.f32 %v1694_v43, %v1675_v54  ;;  %v1734_v45 = vpop.f32.mrf.mxu1 }
 0x182   :  { %v1715_v60 = vadd.f32 %v1714_v44, %v1695_v46 }
 0x184   :  { %v1735_v35 = vadd.f32 %v1734_v45, %v1715_v60 }
 0x185   :  { %v1754_v33 = vpop.f32.mrf.mxu2 }
 0x186   :  { %v1755_v57 = vadd.f32 %v1754_v33, %v1735_v35  ;;  %v1774_v37 = vpop.f32.mrf.mxu3 }
 0x187   :  { %v1794_v27 = vpop.f32.mrf.mxu0 }
 0x188   :  { %v1775_v10 = vadd.f32 %v1774_v37, %v1755_v57  ;;  %v1814_v34 = vpop.f32.mrf.mxu1 }
 0x18a   :  { %v1795_v42 = vadd.f32 %v1794_v27, %v1775_v10 }
 0x18c   :  { %v1815_v38 = vadd.f32 %v1814_v34, %v1795_v42 }
 0x18d   :  { %v1834_v9 = vpop.f32.mrf.mxu2 }
 0x18e   :  { %v1835_v50 = vadd.f32 %v1834_v9, %v1815_v38  ;;  %v1854_v39 = vpop.f32.mrf.mxu3 }
 0x18f   :  { %v1874_v11 = vpop.f32.mrf.mxu0 }
 0x190   :  { %v1855_v61 = vadd.f32 %v1854_v39, %v1835_v50  ;;  %v1894_v19 = vpop.f32.mrf.mxu1 }
 0x192   :  { %v1875_v51 = vadd.f32 %v1874_v11, %v1855_v61 }
 0x194   :  { %v1895_v15 = vadd.f32 %v1894_v19, %v1875_v51 }
 0x195   :  { %v1914_v55 = vpop.f32.mrf.mxu2 }
 0x196   :  { %v1915_v7 = vadd.f32 %v1914_v55, %v1895_v15  ;;  %v1934_v13 = vpop.f32.mrf.mxu3 }
 0x197   :  { %v1954_v1 = vpop.f32.mrf.mxu0 }
 0x198   :  { %v1935_v0 = vadd.f32 %v1934_v13, %v1915_v7  ;;  %v1974_v62 = vpop.f32.mrf.mxu1 }
 0x19a   :  { %v1955_v2 = vadd.f32 %v1954_v1, %v1935_v0 }
 0x19c   :  { %v1975_v3 = vadd.f32 %v1974_v62, %v1955_v2 }
 0x19e   :  { %v1978_v32 = vsel %vm1977_vm7, %v1975_v3, -inf }
 0x19f   :  { %v1979_v4 = vrot.slane %v1978_v32, 4 }
 0x1a1   :  { %v1980_v5 = vmax.f32 %v1978_v32, %v1979_v4 }
 0x1a3   :  { %v1981_v53 = vrot.slane %v1980_v5, 2 }
 0x1a5   :  { %v1982_v59 = vmax.f32 %v1980_v5, %v1981_v53 }
 0x1a7   :  { %v1983_v49 = vrot.slane %v1982_v59, 1 }
 0x1a9   :  { %v1984_v16 = vmax.f32 %v1982_v59, %v1983_v49 }
 0x1ab   :  { %v1985_v47 = vsub.f32 %v1975_v3, %v1984_v16 }
 0x1ad   :  { %v1986_v17 = vmul.f32 1.442695, %v1985_v47 }
 0x1af   :  { %2114 = vpow2.f32 %v1986_v17 }
 0x1b5   :  { %v2115_v63 = vpop.eup %2114 }
 0x1b6   :  { %v1988_v52 = vsel %vm1977_vm7, %v2115_v63, 0.0 }
 0x1b7   :  { %v1989_v56 = vrot.slane %v1988_v52, 4 }
 0x1b9   :  { %v1990_v14 = vadd.f32 %v1989_v56, %v1988_v52 }
 0x1bb   :  { %v1991_v18 = vrot.slane %v1990_v14, 2 }
 0x1bd   :  { %v1992_v21 = vadd.f32 %v1991_v18, %v1990_v14 }
 0x1bf   :  { %v1993_v24 = vrot.slane %v1992_v21, 1 }
 0x1c1   :  { %v1994_v28 = vadd.f32 %v1993_v24, %v1992_v21 }
 0x1c3   :  { %2116 = vrcp.f32 %v1994_v28  ;;  %v2006_v41 = vand.u32 2147483648, %v1994_v28  ;;  %v2004_v58 = vand.u32 2147483647, %v1994_v28  ;;  %vm2000_vm14 = vweird.f32 %v1994_v28 }
 0x1c5   :  { %v2007_v31 = vor.u32 1.1754944e-38, %v2006_v41  ;;  %vm2005_vm5 = vcmp.eq.f32.partialorder %v2004_v58, 8.507059e+37 }
 0x1c9   :  { %v2117_v29 = vpop.eup %2116 }
 0x1ca   :  { %v1996_v36 = vmul.f32 %v2117_v29, %v1994_v28  ;;  %vm2001_vm13 = vweird.f32 %v2117_v29 }
 0x1cb   :  { %vm2002_vm1 = vmor %vm2000_vm14, %vm2001_vm13 }
 0x1cc   :  { %v1997_v22 = vsub.f32 1.0, %v1996_v36 }
 0x1ce   :  { %v1998_v30 = vmul.f32 %v2117_v29, %v1997_v22 }
 0x1d0   :  { %v1999_v12 = vadd.f32 %v2117_v29, %v1998_v30 }
 0x1d2   :  { %v2003_v8 = vsel %vm2002_vm1, %v2117_v29, %v1999_v12 }
 0x1d3   :  { %v2008_v40 = vsel %vm2005_vm5, %v2007_v31, %v2003_v8 }
 0x1d4   :  { %v2009_v20 = vmul.f32 %v2115_v63, %v2008_v40 }
 0x1d6   :  { %2010 = vst.msk [vmem:[#allocation8] sm:$0x3] %vm1977_vm7, %v2009_v20 }
 0x1d7   :  { %2021 = dma.vmem_to_hbm [thread:$0]  %s2017_s10, 32, %s2019_s2, [#allocation4]  }
 0x1d8   :  { %2170 = dma.done.wait [#allocation4], 32  }
 0x1d9   :  { %2171 = vsyncadd [#allocation4], 4294967264 }
 0x1da   :  { %2026 = vsyncpa [#allocation4], 1 }
 0x1db   :  { %2027 = vsyncpa [#allocation5], 1 }
 0x1dc   :  { %2028 = vsyncpa [#allocation7], 1 }

</bundles_post_ra>
